<compile_context>
chip_gen: v7x
topology: tpu7x:2x2x1
jax: 0.10.0
libtpu: 0.0.40
codegen_flags: <defaults>
</compile_context>

<pallas_src>
import functools

import jax
import jax.numpy as jnp
from jax.experimental import pallas as pl
from jax.experimental.pallas import tpu as pltpu

EPS = 1e-5          # PyTorch BatchNorm1d default eps (training mode, biased var)
NEG_INF = -1e30     # mask value for padded class logits
LANE = 128

_VMEM = pl.BlockSpec(memory_space=pltpu.MemorySpace.VMEM)
_SMEM = pl.BlockSpec(memory_space=pltpu.MemorySpace.SMEM)


def _round_up(x, m):
    return ((x + m - 1) // m) * m


# ------------------------------ fused kernel ------------------------------- #

def _bn_rows(y):
    """BatchNorm1d (training, default-init affine): stats over batch (sublane) axis."""
    m = jnp.mean(y, axis=0, keepdims=True)
    v = jnp.mean(y * y, axis=0, keepdims=True) - m * m   # single-pass biased var
    return (y - m) * jax.lax.rsqrt(v + EPS)


def _fused_kernel(y_ref, x1_ref, x2_ref,
                  enc_w_ref, pw1_ref, pw2_ref, pw3_ref,
                  aw1_ref, aw2_ref, cw_ref, cb_ref,
                  out_ref,
                  *, n_sup, n_buff, n_total, num_classes, proj_real,
                  lambda_barlow, temp, thresh, omega_pseudo, omega_ssl):
    x1 = x1_ref[...]                      # [n_total, in_dim_pad]
    x2 = x2_ref[...]

    enc_w = enc_w_ref[...]
    pw1, pw2, pw3 = pw1_ref[...], pw2_ref[...], pw3_ref[...]
    aw1, aw2 = aw1_ref[...], aw2_ref[...]
    cw, cb = cw_ref[...], cb_ref[...]

    def mm(a, b):
        return jnp.dot(a, b, preferred_element_type=jnp.float32)

    def view_chain(x):
        # synthetic encoder: flatten (done outside) + Linear(no bias) + ReLU
        e = jnp.maximum(mm(x, enc_w), 0.0)
        # projector: [Linear -> BN -> ReLU] x2 -> Linear
        h = jnp.maximum(_bn_rows(mm(e, pw1)), 0.0)
        h = jnp.maximum(_bn_rows(mm(h, pw2)), 0.0)
        z = mm(h, pw3)
        return e, _bn_rows(z)             # z already passed through self.bn

    e1, z1 = view_chain(x1)
    e2, z2 = view_chain(x2)

    # -------- Barlow Twins loss (self.bn applied AGAIN inside the criterion) --
    b1 = _bn_rows(z1)
    b2 = _bn_rows(z2)
    c = jax.lax.dot_general(b1, b2, (((0,), (0,)), ((), ())),
                            preferred_element_type=jnp.float32) / n_total
    d_pad = c.shape[0]
    rows = jax.lax.broadcasted_iota(jnp.int32, (d_pad, d_pad), 0)
    cols = jax.lax.broadcasted_iota(jnp.int32, (d_pad, d_pad), 1)
    diag_real = (rows == cols) & (rows < proj_real)
    c2 = c * c                            # padded rows/cols of c are exactly 0
    sum_c2 = jnp.sum(c2)
    diag_c2 = jnp.sum(jnp.where(diag_real, c2, 0.0))
    diag_c = jnp.sum(jnp.where(diag_real, c, 0.0))
    on_diag = diag_c2 - 2.0 * diag_c + float(proj_real)   # sum_diag (c_ii - 1)^2
    off_diag = sum_c2 - diag_c2
    loss_barlow = on_diag + lambda_barlow * off_diag

    # ------------- adapter + classifier on sup + unsup-buffer rows ----------
    n_pseudo = n_sup + n_buff
    pe1 = e1[:n_pseudo]                   # sublane-aligned (offset-0) slices
    pe2 = e2[:n_pseudo]

    def adapter_clf(e):
        h = jnp.maximum(_bn_rows(mm(e, aw1)), 0.0)
        a = mm(h, aw2)
        return mm(a, cw) + cb

    l1 = adapter_clf(pe1)                 # [n_pseudo, C_pad]
    l2 = adapter_clf(pe2)

    cls_idx = jax.lax.broadcasted_iota(jnp.int32, l1.shape, 1)
    cls_valid = cls_idx < num_classes
    l1 = jnp.where(cls_valid, l1, NEG_INF)   # padded classes -> -inf-ish
    l2 = jnp.where(cls_valid, l2, NEG_INF)

    row_idx = jax.lax.broadcasted_iota(jnp.int32, (n_pseudo, 1), 0)
    sup_mask = (row_idx < n_sup).astype(jnp.float32)
    buff_mask = (row_idx >= n_sup).astype(jnp.float32)

    labels = y_ref[...]                   # [n_pseudo, 1] int32 (buffer rows dummy)

    def log_softmax(logits):
        m = jnp.max(logits, axis=-1, keepdims=True)
        lse = jnp.log(jnp.sum(jnp.exp(logits - m), axis=-1, keepdims=True)) + m
        return logits - lse

    def nll_rows(logits, target_col):
        logp = log_softmax(logits)
        onehot = cls_idx == target_col
        return -jnp.sum(jnp.where(onehot, logp, 0.0), axis=-1, keepdims=True)

    # supervised cross-entropy (mean over the n_sup rows, summed over views)
    nll1 = nll_rows(l1, labels)
    nll2 = nll_rows(l2, labels)
    loss_supervised = (jnp.sum(nll1 * sup_mask) + jnp.sum(nll2 * sup_mask)) / n_sup

    # pseudo-label loss: weak view -> targets/confidence, strong view -> CE
    pw = l1 / temp
    mw = jnp.max(pw, axis=-1, keepdims=True)
    ew = jnp.exp(pw - mw)
    p = ew / jnp.sum(ew, axis=-1, keepdims=True)          # softmax(weak / T)
    max_p = jnp.max(p, axis=-1, keepdims=True)
    tgt = jnp.min(jnp.where(p == max_p, cls_idx, l1.shape[1]),
                  axis=-1, keepdims=True)                 # argmax (first index)
    conf = (max_p >= thresh).astype(jnp.float32)
    nll_strong = nll_rows(l2, tgt)
    loss_pseudo = jnp.sum(nll_strong * conf * buff_mask) / n_buff

    loss = loss_supervised + omega_pseudo * loss_pseudo + omega_ssl * loss_barlow
    out_ref[0, 0] = loss
    out_ref[0, 1] = loss_supervised
    out_ref[0, 2] = loss_pseudo
    out_ref[0, 3] = loss_barlow


# ------------------------------ model wiring -------------------------------- #

def init_params(key, *, in_dim, features_dim, proj_hidden, proj_out,
                adapter_hidden, num_classes):
    """Logical weights at real dims, zero-padded to lane-dense (128) shapes."""
    keys = jax.random.split(key, 8)

    def lin(k, fin, fout):
        bound = 1.0 / (fin ** 0.5)
        return jax.random.uniform(k, (fin, fout), jnp.float32, -bound, bound)

    def pad2(w, rpad, cpad):
        return jnp.pad(w, ((0, rpad - w.shape[0]), (0, cpad - w.shape[1])))

    in_p = _round_up(in_dim, LANE)
    f_p = _round_up(features_dim, LANE)
    ph_p = _round_up(proj_hidden, LANE)
    po_p = _round_up(proj_out, LANE)
    ah_p = _round_up(adapter_hidden, LANE)
    nc_p = _round_up(num_classes, LANE)

    bound_b = 1.0 / (features_dim ** 0.5)
    clf_b = jax.random.uniform(keys[7], (num_classes,), jnp.float32,
                               -bound_b, bound_b)

    params = {
        "enc_w":    pad2(lin(keys[0], in_dim, features_dim), in_p, f_p),
        "proj_w1":  pad2(lin(keys[1], features_dim, proj_hidden), f_p, ph_p),
        "proj_w2":  pad2(lin(keys[2], proj_hidden, proj_hidden), ph_p, ph_p),
        "proj_w3":  pad2(lin(keys[3], proj_hidden, proj_out), ph_p, po_p),
        "adapt_w1": pad2(lin(keys[4], features_dim, adapter_hidden), f_p, ah_p),
        "adapt_w2": pad2(lin(keys[5], adapter_hidden, features_dim), ah_p, f_p),
        "clf_w":    pad2(lin(keys[6], features_dim, num_classes), f_p, nc_p),
        "clf_b":    jnp.pad(clf_b, (0, nc_p - num_classes)).reshape(1, nc_p),
    }
    dims = dict(in_dim=in_dim, in_dim_pad=in_p,
                proj_out=proj_out, num_classes=num_classes)
    return params, dims


def hybrid_ssl_semi_forward(params, s_x1, s_x2, s_y,
                            u_curr_x_weak, u_curr_x_strong,
                            u_buff_x_weak, u_buff_x_strong, cfg, dims):
    n_sup = s_x1.shape[0]
    n_buff = u_buff_x_weak.shape[0]
    n_curr = u_curr_x_weak.shape[0]
    n_total = n_sup + n_buff + n_curr
    n_pseudo = n_sup + n_buff
    in_pad = dims["in_dim_pad"] - dims["in_dim"]

    def flat(x):
        x = x.reshape(x.shape[0], -1).astype(jnp.float32)
        return jnp.pad(x, ((0, 0), (0, in_pad))) if in_pad else x

    # concat order matches the PyTorch forward: sup, unsup-buffer, unsup-current
    all_x1 = jnp.concatenate(
        [flat(s_x1), flat(u_buff_x_weak), flat(u_curr_x_weak)], axis=0)
    all_x2 = jnp.concatenate(
        [flat(s_x2), flat(u_buff_x_strong), flat(u_curr_x_strong)], axis=0)

    labels = jnp.pad(s_y.astype(jnp.int32), (0, n_buff)).reshape(n_pseudo, 1)

    kernel = functools.partial(
        _fused_kernel,
        n_sup=n_sup, n_buff=n_buff, n_total=n_total,
        num_classes=dims["num_classes"], proj_real=dims["proj_out"],
        lambda_barlow=cfg["lambda_barlow"], temp=cfg["pseudo_label_temp"],
        thresh=cfg["pseudo_label_thresh"],
        omega_pseudo=cfg["omega_pseudo"], omega_ssl=cfg["omega_ssl"])

    out = pl.pallas_call(
        kernel,
        out_shape=jax.ShapeDtypeStruct((1, 4), jnp.float32),
        in_specs=[_VMEM] * 11,
        out_specs=_SMEM,
    )(labels, all_x1, all_x2,
      params["enc_w"], params["proj_w1"], params["proj_w2"], params["proj_w3"],
      params["adapt_w1"], params["adapt_w2"], params["clf_w"], params["clf_b"])

    return out[0, 0], out[0, 1], out[0, 2], out[0, 3]


# ---------------------------------- demo ------------------------------------ #

if __name__ == "__main__":
    # module hyper-parameters (small synthetic sizes, sublane/lane aligned)
    N_SUP, N_BUFF, N_CURR = 4, 4, 8          # n_total = 16, n_pseudo = 8
    C, H, W = 2, 8, 8                        # in_dim = 128 (lane-dense)
    FEATURES_DIM = 32
    PROJ_HIDDEN = 64
    PROJ_OUTPUT = 64
    ADAPT_HIDDEN = 64
    NUM_CLASSES = 10

    cfg = dict(lambda_barlow=0.005, pseudo_label_temp=1.0,
               pseudo_label_thresh=0.95, omega_pseudo=1.0, omega_ssl=1.0)

    root = jax.random.PRNGKey(0)
    pkey, dkey = jax.random.split(root)
    params, dims = init_params(
        pkey, in_dim=C * H * W, features_dim=FEATURES_DIM,
        proj_hidden=PROJ_HIDDEN, proj_out=PROJ_OUTPUT,
        adapter_hidden=ADAPT_HIDDEN, num_classes=NUM_CLASSES)

    ks = jax.random.split(dkey, 7)
    s_x1 = jax.random.normal(ks[0], (N_SUP, C, H, W), jnp.float32)
    s_x2 = jax.random.normal(ks[1], (N_SUP, C, H, W), jnp.float32)
    s_y = jax.random.randint(ks[2], (N_SUP,), 0, NUM_CLASSES, dtype=jnp.int32)
    u_curr_x_weak = jax.random.normal(ks[3], (N_CURR, C, H, W), jnp.float32)
    u_curr_x_strong = jax.random.normal(ks[4], (N_CURR, C, H, W), jnp.float32)
    u_buff_x_weak = jax.random.normal(ks[5], (N_BUFF, C, H, W), jnp.float32)
    u_buff_x_strong = jax.random.normal(ks[6], (N_BUFF, C, H, W), jnp.float32)

    fwd = jax.jit(functools.partial(hybrid_ssl_semi_forward, cfg=cfg, dims=dims))
    loss, loss_sup, loss_pseudo, loss_barlow = fwd(
        params, s_x1, s_x2, s_y,
        u_curr_x_weak, u_curr_x_strong,
        u_buff_x_weak, u_buff_x_strong)
    jax.block_until_ready((loss, loss_sup, loss_pseudo, loss_barlow))
    print("KERNEL_OK")
</pallas_src>

<mosaic_0001>
module attributes {stable_mosaic.version = 11 : i64} {
  func.func @_fused_kernel(%arg0: memref<8x1xi32, #tpu.memory_space<vmem>>, %arg1: memref<16x128xf32, #tpu.memory_space<vmem>>, %arg2: memref<16x128xf32, #tpu.memory_space<vmem>>, %arg3: memref<128x128xf32, #tpu.memory_space<vmem>>, %arg4: memref<128x128xf32, #tpu.memory_space<vmem>>, %arg5: memref<128x128xf32, #tpu.memory_space<vmem>>, %arg6: memref<128x128xf32, #tpu.memory_space<vmem>>, %arg7: memref<128x128xf32, #tpu.memory_space<vmem>>, %arg8: memref<128x128xf32, #tpu.memory_space<vmem>>, %arg9: memref<128x128xf32, #tpu.memory_space<vmem>>, %arg10: memref<1x128xf32, #tpu.memory_space<vmem>>, %arg11: memref<1x4xf32, #tpu.memory_space<smem>>) attributes {dimension_semantics = [], scalar_prefetch = 0 : i64, scratch_operands = 0 : i64, tpu.core_type = #tpu.core_type<tc>} {
    %c0 = arith.constant 0 : index
    %c0_0 = arith.constant 0 : index
    %0 = vector.load %arg1[%c0, %c0_0] : memref<16x128xf32, #tpu.memory_space<vmem>>, vector<16x128xf32>
    %c0_1 = arith.constant 0 : index
    %c0_2 = arith.constant 0 : index
    %1 = vector.load %arg2[%c0_1, %c0_2] : memref<16x128xf32, #tpu.memory_space<vmem>>, vector<16x128xf32>
    %c0_3 = arith.constant 0 : index
    %c0_4 = arith.constant 0 : index
    %2 = vector.load %arg3[%c0_3, %c0_4] : memref<128x128xf32, #tpu.memory_space<vmem>>, vector<128x128xf32>
    %c0_5 = arith.constant 0 : index
    %c0_6 = arith.constant 0 : index
    %3 = vector.load %arg4[%c0_5, %c0_6] : memref<128x128xf32, #tpu.memory_space<vmem>>, vector<128x128xf32>
    %c0_7 = arith.constant 0 : index
    %c0_8 = arith.constant 0 : index
    %4 = vector.load %arg5[%c0_7, %c0_8] : memref<128x128xf32, #tpu.memory_space<vmem>>, vector<128x128xf32>
    %c0_9 = arith.constant 0 : index
    %c0_10 = arith.constant 0 : index
    %5 = vector.load %arg6[%c0_9, %c0_10] : memref<128x128xf32, #tpu.memory_space<vmem>>, vector<128x128xf32>
    %c0_11 = arith.constant 0 : index
    %c0_12 = arith.constant 0 : index
    %6 = vector.load %arg7[%c0_11, %c0_12] : memref<128x128xf32, #tpu.memory_space<vmem>>, vector<128x128xf32>
    %c0_13 = arith.constant 0 : index
    %c0_14 = arith.constant 0 : index
    %7 = vector.load %arg8[%c0_13, %c0_14] : memref<128x128xf32, #tpu.memory_space<vmem>>, vector<128x128xf32>
    %c0_15 = arith.constant 0 : index
    %c0_16 = arith.constant 0 : index
    %8 = vector.load %arg9[%c0_15, %c0_16] : memref<128x128xf32, #tpu.memory_space<vmem>>, vector<128x128xf32>
    %c0_17 = arith.constant 0 : index
    %c0_18 = arith.constant 0 : index
    %9 = vector.load %arg10[%c0_17, %c0_18] : memref<1x128xf32, #tpu.memory_space<vmem>>, vector<1x128xf32>
    %cst = arith.constant dense<0.000000e+00> : vector<16x128xf32>
    %10 = tpu.matmul %0, %2, %cst {dimension_numbers = #tpu.dot_dimension_numbers<[1], [0], [0], [1], [0, 0, 1, 1], [], []>} : vector<16x128xf32>, vector<128x128xf32>, vector<16x128xf32> -> vector<16x128xf32>
    %cst_19 = arith.constant 0.000000e+00 : f32
    %11 = vector.broadcast %cst_19 : f32 to vector<16x128xf32>
    %12 = arith.maximumf %10, %11 : vector<16x128xf32>
    %cst_20 = arith.constant dense<0.000000e+00> : vector<16x128xf32>
    %13 = tpu.matmul %12, %3, %cst_20 {dimension_numbers = #tpu.dot_dimension_numbers<[1], [0], [0], [1], [0, 0, 1, 1], [], []>} : vector<16x128xf32>, vector<128x128xf32>, vector<16x128xf32> -> vector<16x128xf32>
    %cst_21 = arith.constant dense<0.000000e+00> : vector<128xf32>
    %14 = vector.multi_reduction <add>, %13, %cst_21 [0] : vector<16x128xf32> to vector<128xf32>
    %15 = vector.shape_cast %14 : vector<128xf32> to vector<1x128xf32>
    %cst_22 = arith.constant 1.600000e+01 : f32
    %16 = vector.broadcast %cst_22 : f32 to vector<1x128xf32>
    %17 = arith.divf %15, %16 : vector<1x128xf32>
    %18 = arith.mulf %13, %13 : vector<16x128xf32>
    %cst_23 = arith.constant dense<0.000000e+00> : vector<128xf32>
    %19 = vector.multi_reduction <add>, %18, %cst_23 [0] : vector<16x128xf32> to vector<128xf32>
    %20 = vector.shape_cast %19 : vector<128xf32> to vector<1x128xf32>
    %cst_24 = arith.constant 1.600000e+01 : f32
    %21 = vector.broadcast %cst_24 : f32 to vector<1x128xf32>
    %22 = arith.divf %20, %21 : vector<1x128xf32>
    %23 = arith.mulf %17, %17 : vector<1x128xf32>
    %24 = arith.subf %22, %23 : vector<1x128xf32>
    %25 = vector.broadcast %17 : vector<1x128xf32> to vector<16x128xf32>
    %26 = arith.subf %13, %25 : vector<16x128xf32>
    %cst_25 = arith.constant 9.99999974E-6 : f32
    %27 = vector.broadcast %cst_25 : f32 to vector<1x128xf32>
    %28 = arith.addf %24, %27 : vector<1x128xf32>
    %29 = math.rsqrt %28 : vector<1x128xf32>
    %30 = vector.broadcast %29 : vector<1x128xf32> to vector<16x128xf32>
    %31 = arith.mulf %26, %30 : vector<16x128xf32>
    %cst_26 = arith.constant 0.000000e+00 : f32
    %32 = vector.broadcast %cst_26 : f32 to vector<16x128xf32>
    %33 = arith.maximumf %31, %32 : vector<16x128xf32>
    %cst_27 = arith.constant dense<0.000000e+00> : vector<16x128xf32>
    %34 = tpu.matmul %33, %4, %cst_27 {dimension_numbers = #tpu.dot_dimension_numbers<[1], [0], [0], [1], [0, 0, 1, 1], [], []>} : vector<16x128xf32>, vector<128x128xf32>, vector<16x128xf32> -> vector<16x128xf32>
    %cst_28 = arith.constant dense<0.000000e+00> : vector<128xf32>
    %35 = vector.multi_reduction <add>, %34, %cst_28 [0] : vector<16x128xf32> to vector<128xf32>
    %36 = vector.shape_cast %35 : vector<128xf32> to vector<1x128xf32>
    %cst_29 = arith.constant 1.600000e+01 : f32
    %37 = vector.broadcast %cst_29 : f32 to vector<1x128xf32>
    %38 = arith.divf %36, %37 : vector<1x128xf32>
    %39 = arith.mulf %34, %34 : vector<16x128xf32>
    %cst_30 = arith.constant dense<0.000000e+00> : vector<128xf32>
    %40 = vector.multi_reduction <add>, %39, %cst_30 [0] : vector<16x128xf32> to vector<128xf32>
    %41 = vector.shape_cast %40 : vector<128xf32> to vector<1x128xf32>
    %cst_31 = arith.constant 1.600000e+01 : f32
    %42 = vector.broadcast %cst_31 : f32 to vector<1x128xf32>
    %43 = arith.divf %41, %42 : vector<1x128xf32>
    %44 = arith.mulf %38, %38 : vector<1x128xf32>
    %45 = arith.subf %43, %44 : vector<1x128xf32>
    %46 = vector.broadcast %38 : vector<1x128xf32> to vector<16x128xf32>
    %47 = arith.subf %34, %46 : vector<16x128xf32>
    %cst_32 = arith.constant 9.99999974E-6 : f32
    %48 = vector.broadcast %cst_32 : f32 to vector<1x128xf32>
    %49 = arith.addf %45, %48 : vector<1x128xf32>
    %50 = math.rsqrt %49 : vector<1x128xf32>
    %51 = vector.broadcast %50 : vector<1x128xf32> to vector<16x128xf32>
    %52 = arith.mulf %47, %51 : vector<16x128xf32>
    %cst_33 = arith.constant 0.000000e+00 : f32
    %53 = vector.broadcast %cst_33 : f32 to vector<16x128xf32>
    %54 = arith.maximumf %52, %53 : vector<16x128xf32>
    %cst_34 = arith.constant dense<0.000000e+00> : vector<16x128xf32>
    %55 = tpu.matmul %54, %5, %cst_34 {dimension_numbers = #tpu.dot_dimension_numbers<[1], [0], [0], [1], [0, 0, 1, 1], [], []>} : vector<16x128xf32>, vector<128x128xf32>, vector<16x128xf32> -> vector<16x128xf32>
    %cst_35 = arith.constant dense<0.000000e+00> : vector<128xf32>
    %56 = vector.multi_reduction <add>, %55, %cst_35 [0] : vector<16x128xf32> to vector<128xf32>
    %57 = vector.shape_cast %56 : vector<128xf32> to vector<1x128xf32>
    %cst_36 = arith.constant 1.600000e+01 : f32
    %58 = vector.broadcast %cst_36 : f32 to vector<1x128xf32>
    %59 = arith.divf %57, %58 : vector<1x128xf32>
    %60 = arith.mulf %55, %55 : vector<16x128xf32>
    %cst_37 = arith.constant dense<0.000000e+00> : vector<128xf32>
    %61 = vector.multi_reduction <add>, %60, %cst_37 [0] : vector<16x128xf32> to vector<128xf32>
    %62 = vector.shape_cast %61 : vector<128xf32> to vector<1x128xf32>
    %cst_38 = arith.constant 1.600000e+01 : f32
    %63 = vector.broadcast %cst_38 : f32 to vector<1x128xf32>
    %64 = arith.divf %62, %63 : vector<1x128xf32>
    %65 = arith.mulf %59, %59 : vector<1x128xf32>
    %66 = arith.subf %64, %65 : vector<1x128xf32>
    %67 = vector.broadcast %59 : vector<1x128xf32> to vector<16x128xf32>
    %68 = arith.subf %55, %67 : vector<16x128xf32>
    %cst_39 = arith.constant 9.99999974E-6 : f32
    %69 = vector.broadcast %cst_39 : f32 to vector<1x128xf32>
    %70 = arith.addf %66, %69 : vector<1x128xf32>
    %71 = math.rsqrt %70 : vector<1x128xf32>
    %72 = vector.broadcast %71 : vector<1x128xf32> to vector<16x128xf32>
    %73 = arith.mulf %68, %72 : vector<16x128xf32>
    %cst_40 = arith.constant dense<0.000000e+00> : vector<16x128xf32>
    %74 = tpu.matmul %1, %2, %cst_40 {dimension_numbers = #tpu.dot_dimension_numbers<[1], [0], [0], [1], [0, 0, 1, 1], [], []>} : vector<16x128xf32>, vector<128x128xf32>, vector<16x128xf32> -> vector<16x128xf32>
    %cst_41 = arith.constant 0.000000e+00 : f32
    %75 = vector.broadcast %cst_41 : f32 to vector<16x128xf32>
    %76 = arith.maximumf %74, %75 : vector<16x128xf32>
    %cst_42 = arith.constant dense<0.000000e+00> : vector<16x128xf32>
    %77 = tpu.matmul %76, %3, %cst_42 {dimension_numbers = #tpu.dot_dimension_numbers<[1], [0], [0], [1], [0, 0, 1, 1], [], []>} : vector<16x128xf32>, vector<128x128xf32>, vector<16x128xf32> -> vector<16x128xf32>
    %cst_43 = arith.constant dense<0.000000e+00> : vector<128xf32>
    %78 = vector.multi_reduction <add>, %77, %cst_43 [0] : vector<16x128xf32> to vector<128xf32>
    %79 = vector.shape_cast %78 : vector<128xf32> to vector<1x128xf32>
    %cst_44 = arith.constant 1.600000e+01 : f32
    %80 = vector.broadcast %cst_44 : f32 to vector<1x128xf32>
    %81 = arith.divf %79, %80 : vector<1x128xf32>
    %82 = arith.mulf %77, %77 : vector<16x128xf32>
    %cst_45 = arith.constant dense<0.000000e+00> : vector<128xf32>
    %83 = vector.multi_reduction <add>, %82, %cst_45 [0] : vector<16x128xf32> to vector<128xf32>
    %84 = vector.shape_cast %83 : vector<128xf32> to vector<1x128xf32>
    %cst_46 = arith.constant 1.600000e+01 : f32
    %85 = vector.broadcast %cst_46 : f32 to vector<1x128xf32>
    %86 = arith.divf %84, %85 : vector<1x128xf32>
    %87 = arith.mulf %81, %81 : vector<1x128xf32>
    %88 = arith.subf %86, %87 : vector<1x128xf32>
    %89 = vector.broadcast %81 : vector<1x128xf32> to vector<16x128xf32>
    %90 = arith.subf %77, %89 : vector<16x128xf32>
    %cst_47 = arith.constant 9.99999974E-6 : f32
    %91 = vector.broadcast %cst_47 : f32 to vector<1x128xf32>
    %92 = arith.addf %88, %91 : vector<1x128xf32>
    %93 = math.rsqrt %92 : vector<1x128xf32>
    %94 = vector.broadcast %93 : vector<1x128xf32> to vector<16x128xf32>
    %95 = arith.mulf %90, %94 : vector<16x128xf32>
    %cst_48 = arith.constant 0.000000e+00 : f32
    %96 = vector.broadcast %cst_48 : f32 to vector<16x128xf32>
    %97 = arith.maximumf %95, %96 : vector<16x128xf32>
    %cst_49 = arith.constant dense<0.000000e+00> : vector<16x128xf32>
    %98 = tpu.matmul %97, %4, %cst_49 {dimension_numbers = #tpu.dot_dimension_numbers<[1], [0], [0], [1], [0, 0, 1, 1], [], []>} : vector<16x128xf32>, vector<128x128xf32>, vector<16x128xf32> -> vector<16x128xf32>
    %cst_50 = arith.constant dense<0.000000e+00> : vector<128xf32>
    %99 = vector.multi_reduction <add>, %98, %cst_50 [0] : vector<16x128xf32> to vector<128xf32>
    %100 = vector.shape_cast %99 : vector<128xf32> to vector<1x128xf32>
    %cst_51 = arith.constant 1.600000e+01 : f32
    %101 = vector.broadcast %cst_51 : f32 to vector<1x128xf32>
    %102 = arith.divf %100, %101 : vector<1x128xf32>
    %103 = arith.mulf %98, %98 : vector<16x128xf32>
    %cst_52 = arith.constant dense<0.000000e+00> : vector<128xf32>
    %104 = vector.multi_reduction <add>, %103, %cst_52 [0] : vector<16x128xf32> to vector<128xf32>
    %105 = vector.shape_cast %104 : vector<128xf32> to vector<1x128xf32>
    %cst_53 = arith.constant 1.600000e+01 : f32
    %106 = vector.broadcast %cst_53 : f32 to vector<1x128xf32>
    %107 = arith.divf %105, %106 : vector<1x128xf32>
    %108 = arith.mulf %102, %102 : vector<1x128xf32>
    %109 = arith.subf %107, %108 : vector<1x128xf32>
    %110 = vector.broadcast %102 : vector<1x128xf32> to vector<16x128xf32>
    %111 = arith.subf %98, %110 : vector<16x128xf32>
    %cst_54 = arith.constant 9.99999974E-6 : f32
    %112 = vector.broadcast %cst_54 : f32 to vector<1x128xf32>
    %113 = arith.addf %109, %112 : vector<1x128xf32>
    %114 = math.rsqrt %113 : vector<1x128xf32>
    %115 = vector.broadcast %114 : vector<1x128xf32> to vector<16x128xf32>
    %116 = arith.mulf %111, %115 : vector<16x128xf32>
    %cst_55 = arith.constant 0.000000e+00 : f32
    %117 = vector.broadcast %cst_55 : f32 to vector<16x128xf32>
    %118 = arith.maximumf %116, %117 : vector<16x128xf32>
    %cst_56 = arith.constant dense<0.000000e+00> : vector<16x128xf32>
    %119 = tpu.matmul %118, %5, %cst_56 {dimension_numbers = #tpu.dot_dimension_numbers<[1], [0], [0], [1], [0, 0, 1, 1], [], []>} : vector<16x128xf32>, vector<128x128xf32>, vector<16x128xf32> -> vector<16x128xf32>
    %cst_57 = arith.constant dense<0.000000e+00> : vector<128xf32>
    %120 = vector.multi_reduction <add>, %119, %cst_57 [0] : vector<16x128xf32> to vector<128xf32>
    %121 = vector.shape_cast %120 : vector<128xf32> to vector<1x128xf32>
    %cst_58 = arith.constant 1.600000e+01 : f32
    %122 = vector.broadcast %cst_58 : f32 to vector<1x128xf32>
    %123 = arith.divf %121, %122 : vector<1x128xf32>
    %124 = arith.mulf %119, %119 : vector<16x128xf32>
    %cst_59 = arith.constant dense<0.000000e+00> : vector<128xf32>
    %125 = vector.multi_reduction <add>, %124, %cst_59 [0] : vector<16x128xf32> to vector<128xf32>
    %126 = vector.shape_cast %125 : vector<128xf32> to vector<1x128xf32>
    %cst_60 = arith.constant 1.600000e+01 : f32
    %127 = vector.broadcast %cst_60 : f32 to vector<1x128xf32>
    %128 = arith.divf %126, %127 : vector<1x128xf32>
    %129 = arith.mulf %123, %123 : vector<1x128xf32>
    %130 = arith.subf %128, %129 : vector<1x128xf32>
    %131 = vector.broadcast %123 : vector<1x128xf32> to vector<16x128xf32>
    %132 = arith.subf %119, %131 : vector<16x128xf32>
    %cst_61 = arith.constant 9.99999974E-6 : f32
    %133 = vector.broadcast %cst_61 : f32 to vector<1x128xf32>
    %134 = arith.addf %130, %133 : vector<1x128xf32>
    %135 = math.rsqrt %134 : vector<1x128xf32>
    %136 = vector.broadcast %135 : vector<1x128xf32> to vector<16x128xf32>
    %137 = arith.mulf %132, %136 : vector<16x128xf32>
    %cst_62 = arith.constant dense<0.000000e+00> : vector<128xf32>
    %138 = vector.multi_reduction <add>, %73, %cst_62 [0] : vector<16x128xf32> to vector<128xf32>
    %139 = vector.shape_cast %138 : vector<128xf32> to vector<1x128xf32>
    %cst_63 = arith.constant 1.600000e+01 : f32
    %140 = vector.broadcast %cst_63 : f32 to vector<1x128xf32>
    %141 = arith.divf %139, %140 : vector<1x128xf32>
    %142 = arith.mulf %73, %73 : vector<16x128xf32>
    %cst_64 = arith.constant dense<0.000000e+00> : vector<128xf32>
    %143 = vector.multi_reduction <add>, %142, %cst_64 [0] : vector<16x128xf32> to vector<128xf32>
    %144 = vector.shape_cast %143 : vector<128xf32> to vector<1x128xf32>
    %cst_65 = arith.constant 1.600000e+01 : f32
    %145 = vector.broadcast %cst_65 : f32 to vector<1x128xf32>
    %146 = arith.divf %144, %145 : vector<1x128xf32>
    %147 = arith.mulf %141, %141 : vector<1x128xf32>
    %148 = arith.subf %146, %147 : vector<1x128xf32>
    %149 = vector.broadcast %141 : vector<1x128xf32> to vector<16x128xf32>
    %150 = arith.subf %73, %149 : vector<16x128xf32>
    %cst_66 = arith.constant 9.99999974E-6 : f32
    %151 = vector.broadcast %cst_66 : f32 to vector<1x128xf32>
    %152 = arith.addf %148, %151 : vector<1x128xf32>
    %153 = math.rsqrt %152 : vector<1x128xf32>
    %154 = vector.broadcast %153 : vector<1x128xf32> to vector<16x128xf32>
    %155 = arith.mulf %150, %154 : vector<16x128xf32>
    %cst_67 = arith.constant dense<0.000000e+00> : vector<128xf32>
    %156 = vector.multi_reduction <add>, %137, %cst_67 [0] : vector<16x128xf32> to vector<128xf32>
    %157 = vector.shape_cast %156 : vector<128xf32> to vector<1x128xf32>
    %cst_68 = arith.constant 1.600000e+01 : f32
    %158 = vector.broadcast %cst_68 : f32 to vector<1x128xf32>
    %159 = arith.divf %157, %158 : vector<1x128xf32>
    %160 = arith.mulf %137, %137 : vector<16x128xf32>
    %cst_69 = arith.constant dense<0.000000e+00> : vector<128xf32>
    %161 = vector.multi_reduction <add>, %160, %cst_69 [0] : vector<16x128xf32> to vector<128xf32>
    %162 = vector.shape_cast %161 : vector<128xf32> to vector<1x128xf32>
    %cst_70 = arith.constant 1.600000e+01 : f32
    %163 = vector.broadcast %cst_70 : f32 to vector<1x128xf32>
    %164 = arith.divf %162, %163 : vector<1x128xf32>
    %165 = arith.mulf %159, %159 : vector<1x128xf32>
    %166 = arith.subf %164, %165 : vector<1x128xf32>
    %167 = vector.broadcast %159 : vector<1x128xf32> to vector<16x128xf32>
    %168 = arith.subf %137, %167 : vector<16x128xf32>
    %cst_71 = arith.constant 9.99999974E-6 : f32
    %169 = vector.broadcast %cst_71 : f32 to vector<1x128xf32>
    %170 = arith.addf %166, %169 : vector<1x128xf32>
    %171 = math.rsqrt %170 : vector<1x128xf32>
    %172 = vector.broadcast %171 : vector<1x128xf32> to vector<16x128xf32>
    %173 = arith.mulf %168, %172 : vector<16x128xf32>
    %cst_72 = arith.constant dense<0.000000e+00> : vector<128x128xf32>
    %174 = tpu.matmul %155, %173, %cst_72 {dimension_numbers = #tpu.dot_dimension_numbers<[0], [0], [1], [1], [0, 1, 1, 1], [], []>} : vector<16x128xf32>, vector<16x128xf32>, vector<128x128xf32> -> vector<128x128xf32>
    %cst_73 = arith.constant 1.600000e+01 : f32
    %175 = vector.broadcast %cst_73 : f32 to vector<128x128xf32>
    %176 = arith.divf %174, %175 : vector<128x128xf32>
    %177 = tpu.iota {dimensions = array<i32: 0>} : vector<128x128xi32>
    %178 = tpu.iota {dimensions = array<i32: 1>} : vector<128x128xi32>
    %179 = arith.cmpi eq, %177, %178 : vector<128x128xi32>
    %c64_i32 = arith.constant 64 : i32
    %180 = vector.broadcast %c64_i32 : i32 to vector<128x128xi32>
    %181 = arith.cmpi slt, %177, %180 : vector<128x128xi32>
    %182 = arith.andi %179, %181 : vector<128x128xi1>
    %183 = arith.mulf %176, %176 : vector<128x128xf32>
    %184 = vector.shape_cast %183 : vector<128x128xf32> to vector<1x128x128xf32>
    %cst_74 = arith.constant dense<0.000000e+00> : vector<1xf32>
    %185 = vector.multi_reduction <add>, %184, %cst_74 [1, 2] : vector<1x128x128xf32> to vector<1xf32>
    %186 = vector.shape_cast %185 : vector<1xf32> to vector<1x1x1xf32>
    %187 = vector.extract %186[0, 0, 0] : f32 from vector<1x1x1xf32>
    %cst_75 = arith.constant 0.000000e+00 : f32
    %188 = vector.broadcast %cst_75 : f32 to vector<128x128xf32>
    %189 = arith.select %182, %183, %188 : vector<128x128xi1>, vector<128x128xf32>
    %190 = vector.shape_cast %189 : vector<128x128xf32> to vector<1x128x128xf32>
    %cst_76 = arith.constant dense<0.000000e+00> : vector<1xf32>
    %191 = vector.multi_reduction <add>, %190, %cst_76 [1, 2] : vector<1x128x128xf32> to vector<1xf32>
    %192 = vector.shape_cast %191 : vector<1xf32> to vector<1x1x1xf32>
    %193 = vector.extract %192[0, 0, 0] : f32 from vector<1x1x1xf32>
    %cst_77 = arith.constant 0.000000e+00 : f32
    %194 = vector.broadcast %cst_77 : f32 to vector<128x128xf32>
    %195 = arith.select %182, %176, %194 : vector<128x128xi1>, vector<128x128xf32>
    %196 = vector.shape_cast %195 : vector<128x128xf32> to vector<1x128x128xf32>
    %cst_78 = arith.constant dense<0.000000e+00> : vector<1xf32>
    %197 = vector.multi_reduction <add>, %196, %cst_78 [1, 2] : vector<1x128x128xf32> to vector<1xf32>
    %198 = vector.shape_cast %197 : vector<1xf32> to vector<1x1x1xf32>
    %199 = vector.extract %198[0, 0, 0] : f32 from vector<1x1x1xf32>
    %cst_79 = arith.constant 2.000000e+00 : f32
    %200 = arith.mulf %cst_79, %199 : f32
    %201 = arith.subf %193, %200 : f32
    %cst_80 = arith.constant 6.400000e+01 : f32
    %202 = arith.addf %201, %cst_80 : f32
    %203 = arith.subf %187, %193 : f32
    %cst_81 = arith.constant 5.000000e-03 : f32
    %204 = arith.mulf %cst_81, %203 : f32
    %205 = arith.addf %202, %204 : f32
    %206 = vector.extract_strided_slice %12 {offsets = [0, 0], sizes = [8, 128], strides = [1, 1]} : vector<16x128xf32> to vector<8x128xf32>
    %207 = vector.extract_strided_slice %76 {offsets = [0, 0], sizes = [8, 128], strides = [1, 1]} : vector<16x128xf32> to vector<8x128xf32>
    %cst_82 = arith.constant dense<0.000000e+00> : vector<8x128xf32>
    %208 = tpu.matmul %206, %6, %cst_82 {dimension_numbers = #tpu.dot_dimension_numbers<[1], [0], [0], [1], [0, 0, 1, 1], [], []>} : vector<8x128xf32>, vector<128x128xf32>, vector<8x128xf32> -> vector<8x128xf32>
    %cst_83 = arith.constant dense<0.000000e+00> : vector<128xf32>
    %209 = vector.multi_reduction <add>, %208, %cst_83 [0] : vector<8x128xf32> to vector<128xf32>
    %210 = vector.shape_cast %209 : vector<128xf32> to vector<1x128xf32>
    %cst_84 = arith.constant 8.000000e+00 : f32
    %211 = vector.broadcast %cst_84 : f32 to vector<1x128xf32>
    %212 = arith.divf %210, %211 : vector<1x128xf32>
    %213 = arith.mulf %208, %208 : vector<8x128xf32>
    %cst_85 = arith.constant dense<0.000000e+00> : vector<128xf32>
    %214 = vector.multi_reduction <add>, %213, %cst_85 [0] : vector<8x128xf32> to vector<128xf32>
    %215 = vector.shape_cast %214 : vector<128xf32> to vector<1x128xf32>
    %cst_86 = arith.constant 8.000000e+00 : f32
    %216 = vector.broadcast %cst_86 : f32 to vector<1x128xf32>
    %217 = arith.divf %215, %216 : vector<1x128xf32>
    %218 = arith.mulf %212, %212 : vector<1x128xf32>
    %219 = arith.subf %217, %218 : vector<1x128xf32>
    %220 = vector.broadcast %212 : vector<1x128xf32> to vector<8x128xf32>
    %221 = arith.subf %208, %220 : vector<8x128xf32>
    %cst_87 = arith.constant 9.99999974E-6 : f32
    %222 = vector.broadcast %cst_87 : f32 to vector<1x128xf32>
    %223 = arith.addf %219, %222 : vector<1x128xf32>
    %224 = math.rsqrt %223 : vector<1x128xf32>
    %225 = vector.broadcast %224 : vector<1x128xf32> to vector<8x128xf32>
    %226 = arith.mulf %221, %225 : vector<8x128xf32>
    %cst_88 = arith.constant 0.000000e+00 : f32
    %227 = vector.broadcast %cst_88 : f32 to vector<8x128xf32>
    %228 = arith.maximumf %226, %227 : vector<8x128xf32>
    %cst_89 = arith.constant dense<0.000000e+00> : vector<8x128xf32>
    %229 = tpu.matmul %228, %7, %cst_89 {dimension_numbers = #tpu.dot_dimension_numbers<[1], [0], [0], [1], [0, 0, 1, 1], [], []>} : vector<8x128xf32>, vector<128x128xf32>, vector<8x128xf32> -> vector<8x128xf32>
    %cst_90 = arith.constant dense<0.000000e+00> : vector<8x128xf32>
    %230 = tpu.matmul %229, %8, %cst_90 {dimension_numbers = #tpu.dot_dimension_numbers<[1], [0], [0], [1], [0, 0, 1, 1], [], []>} : vector<8x128xf32>, vector<128x128xf32>, vector<8x128xf32> -> vector<8x128xf32>
    %231 = vector.broadcast %9 : vector<1x128xf32> to vector<8x128xf32>
    %232 = arith.addf %230, %231 : vector<8x128xf32>
    %cst_91 = arith.constant dense<0.000000e+00> : vector<8x128xf32>
    %233 = tpu.matmul %207, %6, %cst_91 {dimension_numbers = #tpu.dot_dimension_numbers<[1], [0], [0], [1], [0, 0, 1, 1], [], []>} : vector<8x128xf32>, vector<128x128xf32>, vector<8x128xf32> -> vector<8x128xf32>
    %cst_92 = arith.constant dense<0.000000e+00> : vector<128xf32>
    %234 = vector.multi_reduction <add>, %233, %cst_92 [0] : vector<8x128xf32> to vector<128xf32>
    %235 = vector.shape_cast %234 : vector<128xf32> to vector<1x128xf32>
    %cst_93 = arith.constant 8.000000e+00 : f32
    %236 = vector.broadcast %cst_93 : f32 to vector<1x128xf32>
    %237 = arith.divf %235, %236 : vector<1x128xf32>
    %238 = arith.mulf %233, %233 : vector<8x128xf32>
    %cst_94 = arith.constant dense<0.000000e+00> : vector<128xf32>
    %239 = vector.multi_reduction <add>, %238, %cst_94 [0] : vector<8x128xf32> to vector<128xf32>
    %240 = vector.shape_cast %239 : vector<128xf32> to vector<1x128xf32>
    %cst_95 = arith.constant 8.000000e+00 : f32
    %241 = vector.broadcast %cst_95 : f32 to vector<1x128xf32>
    %242 = arith.divf %240, %241 : vector<1x128xf32>
    %243 = arith.mulf %237, %237 : vector<1x128xf32>
    %244 = arith.subf %242, %243 : vector<1x128xf32>
    %245 = vector.broadcast %237 : vector<1x128xf32> to vector<8x128xf32>
    %246 = arith.subf %233, %245 : vector<8x128xf32>
    %cst_96 = arith.constant 9.99999974E-6 : f32
    %247 = vector.broadcast %cst_96 : f32 to vector<1x128xf32>
    %248 = arith.addf %244, %247 : vector<1x128xf32>
    %249 = math.rsqrt %248 : vector<1x128xf32>
    %250 = vector.broadcast %249 : vector<1x128xf32> to vector<8x128xf32>
    %251 = arith.mulf %246, %250 : vector<8x128xf32>
    %cst_97 = arith.constant 0.000000e+00 : f32
    %252 = vector.broadcast %cst_97 : f32 to vector<8x128xf32>
    %253 = arith.maximumf %251, %252 : vector<8x128xf32>
    %cst_98 = arith.constant dense<0.000000e+00> : vector<8x128xf32>
    %254 = tpu.matmul %253, %7, %cst_98 {dimension_numbers = #tpu.dot_dimension_numbers<[1], [0], [0], [1], [0, 0, 1, 1], [], []>} : vector<8x128xf32>, vector<128x128xf32>, vector<8x128xf32> -> vector<8x128xf32>
    %cst_99 = arith.constant dense<0.000000e+00> : vector<8x128xf32>
    %255 = tpu.matmul %254, %8, %cst_99 {dimension_numbers = #tpu.dot_dimension_numbers<[1], [0], [0], [1], [0, 0, 1, 1], [], []>} : vector<8x128xf32>, vector<128x128xf32>, vector<8x128xf32> -> vector<8x128xf32>
    %256 = vector.broadcast %9 : vector<1x128xf32> to vector<8x128xf32>
    %257 = arith.addf %255, %256 : vector<8x128xf32>
    %258 = tpu.iota {dimensions = array<i32: 1>} : vector<8x128xi32>
    %c10_i32 = arith.constant 10 : i32
    %259 = vector.broadcast %c10_i32 : i32 to vector<8x128xi32>
    %260 = arith.cmpi slt, %258, %259 : vector<8x128xi32>
    %cst_100 = arith.constant -1.000000e+30 : f32
    %261 = vector.broadcast %cst_100 : f32 to vector<8x128xf32>
    %262 = arith.select %260, %232, %261 : vector<8x128xi1>, vector<8x128xf32>
    %cst_101 = arith.constant -1.000000e+30 : f32
    %263 = vector.broadcast %cst_101 : f32 to vector<8x128xf32>
    %264 = arith.select %260, %257, %263 : vector<8x128xi1>, vector<8x128xf32>
    %265 = tpu.iota {dimensions = array<i32: 0>} : vector<8x1xi32>
    %c4_i32 = arith.constant 4 : i32
    %266 = vector.broadcast %c4_i32 : i32 to vector<8x1xi32>
    %267 = arith.cmpi slt, %265, %266 : vector<8x1xi32>
    %268 = arith.extui %267 : vector<8x1xi1> to vector<8x1xi32>
    %269 = arith.sitofp %268 : vector<8x1xi32> to vector<8x1xf32>
    %c4_i32_102 = arith.constant 4 : i32
    %270 = vector.broadcast %c4_i32_102 : i32 to vector<8x1xi32>
    %271 = arith.cmpi sge, %265, %270 : vector<8x1xi32>
    %272 = arith.extui %271 : vector<8x1xi1> to vector<8x1xi32>
    %273 = arith.sitofp %272 : vector<8x1xi32> to vector<8x1xf32>
    %c0_103 = arith.constant 0 : index
    %c0_104 = arith.constant 0 : index
    %274 = vector.load %arg0[%c0_103, %c0_104] : memref<8x1xi32, #tpu.memory_space<vmem>>, vector<8x1xi32>
    %cst_105 = arith.constant dense<0xFF800000> : vector<8xf32>
    %275 = vector.multi_reduction <maximumf>, %262, %cst_105 [1] : vector<8x128xf32> to vector<8xf32>
    %276 = vector.shape_cast %275 : vector<8xf32> to vector<8x1xf32>
    %277 = vector.broadcast %276 : vector<8x1xf32> to vector<8x128xf32>
    %278 = arith.subf %262, %277 : vector<8x128xf32>
    %279 = math.exp %278 : vector<8x128xf32>
    %cst_106 = arith.constant dense<0.000000e+00> : vector<8xf32>
    %280 = vector.multi_reduction <add>, %279, %cst_106 [1] : vector<8x128xf32> to vector<8xf32>
    %281 = vector.shape_cast %280 : vector<8xf32> to vector<8x1xf32>
    %282 = math.log %281 : vector<8x1xf32>
    %283 = arith.addf %282, %276 : vector<8x1xf32>
    %284 = vector.broadcast %283 : vector<8x1xf32> to vector<8x128xf32>
    %285 = arith.subf %262, %284 : vector<8x128xf32>
    %286 = vector.broadcast %274 : vector<8x1xi32> to vector<8x128xi32>
    %287 = arith.cmpi eq, %258, %286 : vector<8x128xi32>
    %cst_107 = arith.constant 0.000000e+00 : f32
    %288 = vector.broadcast %cst_107 : f32 to vector<8x128xf32>
    %289 = arith.select %287, %285, %288 : vector<8x128xi1>, vector<8x128xf32>
    %cst_108 = arith.constant dense<0.000000e+00> : vector<8xf32>
    %290 = vector.multi_reduction <add>, %289, %cst_108 [1] : vector<8x128xf32> to vector<8xf32>
    %291 = vector.shape_cast %290 : vector<8xf32> to vector<8x1xf32>
    %cst_109 = arith.constant 0.000000e+00 : f32
    %292 = vector.broadcast %cst_109 : f32 to vector<8x1xf32>
    %293 = arith.subf %292, %291 : vector<8x1xf32>
    %cst_110 = arith.constant dense<0xFF800000> : vector<8xf32>
    %294 = vector.multi_reduction <maximumf>, %264, %cst_110 [1] : vector<8x128xf32> to vector<8xf32>
    %295 = vector.shape_cast %294 : vector<8xf32> to vector<8x1xf32>
    %296 = vector.broadcast %295 : vector<8x1xf32> to vector<8x128xf32>
    %297 = arith.subf %264, %296 : vector<8x128xf32>
    %298 = math.exp %297 : vector<8x128xf32>
    %cst_111 = arith.constant dense<0.000000e+00> : vector<8xf32>
    %299 = vector.multi_reduction <add>, %298, %cst_111 [1] : vector<8x128xf32> to vector<8xf32>
    %300 = vector.shape_cast %299 : vector<8xf32> to vector<8x1xf32>
    %301 = math.log %300 : vector<8x1xf32>
    %302 = arith.addf %301, %295 : vector<8x1xf32>
    %303 = vector.broadcast %302 : vector<8x1xf32> to vector<8x128xf32>
    %304 = arith.subf %264, %303 : vector<8x128xf32>
    %305 = vector.broadcast %274 : vector<8x1xi32> to vector<8x128xi32>
    %306 = arith.cmpi eq, %258, %305 : vector<8x128xi32>
    %cst_112 = arith.constant 0.000000e+00 : f32
    %307 = vector.broadcast %cst_112 : f32 to vector<8x128xf32>
    %308 = arith.select %306, %304, %307 : vector<8x128xi1>, vector<8x128xf32>
    %cst_113 = arith.constant dense<0.000000e+00> : vector<8xf32>
    %309 = vector.multi_reduction <add>, %308, %cst_113 [1] : vector<8x128xf32> to vector<8xf32>
    %310 = vector.shape_cast %309 : vector<8xf32> to vector<8x1xf32>
    %cst_114 = arith.constant 0.000000e+00 : f32
    %311 = vector.broadcast %cst_114 : f32 to vector<8x1xf32>
    %312 = arith.subf %311, %310 : vector<8x1xf32>
    %313 = arith.mulf %293, %269 : vector<8x1xf32>
    %314 = vector.shape_cast %313 : vector<8x1xf32> to vector<1x8x1xf32>
    %cst_115 = arith.constant dense<0.000000e+00> : vector<1xf32>
    %315 = vector.multi_reduction <add>, %314, %cst_115 [1, 2] : vector<1x8x1xf32> to vector<1xf32>
    %316 = vector.shape_cast %315 : vector<1xf32> to vector<1x1x1xf32>
    %317 = vector.extract %316[0, 0, 0] : f32 from vector<1x1x1xf32>
    %318 = arith.mulf %312, %269 : vector<8x1xf32>
    %319 = vector.shape_cast %318 : vector<8x1xf32> to vector<1x8x1xf32>
    %cst_116 = arith.constant dense<0.000000e+00> : vector<1xf32>
    %320 = vector.multi_reduction <add>, %319, %cst_116 [1, 2] : vector<1x8x1xf32> to vector<1xf32>
    %321 = vector.shape_cast %320 : vector<1xf32> to vector<1x1x1xf32>
    %322 = vector.extract %321[0, 0, 0] : f32 from vector<1x1x1xf32>
    %323 = arith.addf %317, %322 : f32
    %cst_117 = arith.constant 4.000000e+00 : f32
    %324 = arith.divf %323, %cst_117 : f32
    %cst_118 = arith.constant 1.000000e+00 : f32
    %325 = vector.broadcast %cst_118 : f32 to vector<8x128xf32>
    %326 = arith.divf %262, %325 : vector<8x128xf32>
    %cst_119 = arith.constant dense<0xFF800000> : vector<8xf32>
    %327 = vector.multi_reduction <maximumf>, %326, %cst_119 [1] : vector<8x128xf32> to vector<8xf32>
    %328 = vector.shape_cast %327 : vector<8xf32> to vector<8x1xf32>
    %329 = vector.broadcast %328 : vector<8x1xf32> to vector<8x128xf32>
    %330 = arith.subf %326, %329 : vector<8x128xf32>
    %331 = math.exp %330 : vector<8x128xf32>
    %cst_120 = arith.constant dense<0.000000e+00> : vector<8xf32>
    %332 = vector.multi_reduction <add>, %331, %cst_120 [1] : vector<8x128xf32> to vector<8xf32>
    %333 = vector.shape_cast %332 : vector<8xf32> to vector<8x1xf32>
    %334 = vector.broadcast %333 : vector<8x1xf32> to vector<8x128xf32>
    %335 = arith.divf %331, %334 : vector<8x128xf32>
    %cst_121 = arith.constant dense<0xFF800000> : vector<8xf32>
    %336 = vector.multi_reduction <maximumf>, %335, %cst_121 [1] : vector<8x128xf32> to vector<8xf32>
    %337 = vector.shape_cast %336 : vector<8xf32> to vector<8x1xf32>
    %338 = vector.broadcast %337 : vector<8x1xf32> to vector<8x128xf32>
    %339 = arith.cmpf oeq, %335, %338 : vector<8x128xf32>
    %c128_i32 = arith.constant 128 : i32
    %340 = vector.broadcast %c128_i32 : i32 to vector<8x128xi32>
    %341 = arith.select %339, %258, %340 : vector<8x128xi1>, vector<8x128xi32>
    %cst_122 = arith.constant dense<2147483647> : vector<8xi32>
    %342 = vector.multi_reduction <minsi>, %341, %cst_122 [1] : vector<8x128xi32> to vector<8xi32>
    %343 = vector.shape_cast %342 : vector<8xi32> to vector<8x1xi32>
    %cst_123 = arith.constant 0.949999988 : f32
    %344 = vector.broadcast %cst_123 : f32 to vector<8x1xf32>
    %345 = arith.cmpf oge, %337, %344 : vector<8x1xf32>
    %346 = arith.extui %345 : vector<8x1xi1> to vector<8x1xi32>
    %347 = arith.sitofp %346 : vector<8x1xi32> to vector<8x1xf32>
    %cst_124 = arith.constant dense<0xFF800000> : vector<8xf32>
    %348 = vector.multi_reduction <maximumf>, %264, %cst_124 [1] : vector<8x128xf32> to vector<8xf32>
    %349 = vector.shape_cast %348 : vector<8xf32> to vector<8x1xf32>
    %350 = vector.broadcast %349 : vector<8x1xf32> to vector<8x128xf32>
    %351 = arith.subf %264, %350 : vector<8x128xf32>
    %352 = math.exp %351 : vector<8x128xf32>
    %cst_125 = arith.constant dense<0.000000e+00> : vector<8xf32>
    %353 = vector.multi_reduction <add>, %352, %cst_125 [1] : vector<8x128xf32> to vector<8xf32>
    %354 = vector.shape_cast %353 : vector<8xf32> to vector<8x1xf32>
    %355 = math.log %354 : vector<8x1xf32>
    %356 = arith.addf %355, %349 : vector<8x1xf32>
    %357 = vector.broadcast %356 : vector<8x1xf32> to vector<8x128xf32>
    %358 = arith.subf %264, %357 : vector<8x128xf32>
    %359 = vector.broadcast %343 : vector<8x1xi32> to vector<8x128xi32>
    %360 = arith.cmpi eq, %258, %359 : vector<8x128xi32>
    %cst_126 = arith.constant 0.000000e+00 : f32
    %361 = vector.broadcast %cst_126 : f32 to vector<8x128xf32>
    %362 = arith.select %360, %358, %361 : vector<8x128xi1>, vector<8x128xf32>
    %cst_127 = arith.constant dense<0.000000e+00> : vector<8xf32>
    %363 = vector.multi_reduction <add>, %362, %cst_127 [1] : vector<8x128xf32> to vector<8xf32>
    %364 = vector.shape_cast %363 : vector<8xf32> to vector<8x1xf32>
    %cst_128 = arith.constant 0.000000e+00 : f32
    %365 = vector.broadcast %cst_128 : f32 to vector<8x1xf32>
    %366 = arith.subf %365, %364 : vector<8x1xf32>
    %367 = arith.mulf %366, %347 : vector<8x1xf32>
    %368 = arith.mulf %367, %273 : vector<8x1xf32>
    %369 = vector.shape_cast %368 : vector<8x1xf32> to vector<1x8x1xf32>
    %cst_129 = arith.constant dense<0.000000e+00> : vector<1xf32>
    %370 = vector.multi_reduction <add>, %369, %cst_129 [1, 2] : vector<1x8x1xf32> to vector<1xf32>
    %371 = vector.shape_cast %370 : vector<1xf32> to vector<1x1x1xf32>
    %372 = vector.extract %371[0, 0, 0] : f32 from vector<1x1x1xf32>
    %cst_130 = arith.constant 4.000000e+00 : f32
    %373 = arith.divf %372, %cst_130 : f32
    %cst_131 = arith.constant 1.000000e+00 : f32
    %374 = arith.mulf %cst_131, %373 : f32
    %375 = arith.addf %324, %374 : f32
    %cst_132 = arith.constant 1.000000e+00 : f32
    %376 = arith.mulf %cst_132, %205 : f32
    %377 = arith.addf %375, %376 : f32
    %c0_133 = arith.constant 0 : index
    %c0_134 = arith.constant 0 : index
    %378 = memref.load %arg11[%c0_133, %c0_134] : memref<1x4xf32, #tpu.memory_space<smem>>
    memref.store %377, %arg11[%c0_133, %c0_134] : memref<1x4xf32, #tpu.memory_space<smem>>
    %c0_135 = arith.constant 0 : index
    %c1 = arith.constant 1 : index
    %379 = memref.load %arg11[%c0_135, %c1] : memref<1x4xf32, #tpu.memory_space<smem>>
    memref.store %324, %arg11[%c0_135, %c1] : memref<1x4xf32, #tpu.memory_space<smem>>
    %c0_136 = arith.constant 0 : index
    %c2 = arith.constant 2 : index
    %380 = memref.load %arg11[%c0_136, %c2] : memref<1x4xf32, #tpu.memory_space<smem>>
    memref.store %373, %arg11[%c0_136, %c2] : memref<1x4xf32, #tpu.memory_space<smem>>
    %c0_137 = arith.constant 0 : index
    %c3 = arith.constant 3 : index
    %381 = memref.load %arg11[%c0_137, %c3] : memref<1x4xf32, #tpu.memory_space<smem>>
    memref.store %205, %arg11[%c0_137, %c3] : memref<1x4xf32, #tpu.memory_space<smem>>
    return
  }
}

</mosaic_0001>

<bundles_post_ra>
// kernel: hybrid_ssl_semi_forward.1
= control target key start
LH: loop header
LB: loop body
LE: loop exit
PB: predicated region body
PF: predicated region fallthrough
CT: control target
= control target key end

     0   :  { %16 = vsyncpa [#allocation3], 0  ;;  %s4200_s0 = inlined_call_operand.vmem [shape: s32[8,1], index: 0, kind: input, shape index: {}]   ;;  %s4201_s1 = inlined_call_operand.vmem [shape: f32[16,128], index: 1, kind: input, shape index: {}]   ;;  %s4202_s2 = inlined_call_operand.vmem [shape: f32[16,128], index: 2, kind: input, shape index: {}]   ;;  %s4203_s3 = inlined_call_operand.vmem [shape: f32[128,128], index: 3, kind: input, shape index: {}]   ;;  %s4204_s4 = inlined_call_operand.vmem [shape: f32[128,128], index: 4, kind: input, shape index: {}]   ;;  %s4205_s5 = inlined_call_operand.vmem [shape: f32[128,128], index: 5, kind: input, shape index: {}]   ;;  %s4206_s6 = inlined_call_operand.vmem [shape: f32[128,128], index: 6, kind: input, shape index: {}]   ;;  %s4207_s7 = inlined_call_operand.hbm [shape: f32[128,128], index: 7, kind: input, shape index: {}]   ;;  %s4208_s8 = inlined_call_operand.hbm [shape: f32[128,128], index: 8, kind: input, shape index: {}]   ;;  %s4209_s9 = inlined_call_operand.hbm [shape: f32[128,128], index: 9, kind: input, shape index: {}]   ;;  %s4210_s10 = inlined_call_operand.vmem [shape: f32[1,128], index: 10, kind: input, shape index: {}]   ;;  %s4211_s11 = inlined_call_operand.vmem [shape: f32[1,4], index: 11, kind: output, shape index: {}]  }
   0x1   :  { %17 = vsyncpa [#allocation6], 0 }
   0x2   :  { %18 = vsyncpa [#allocation4], 0  ;;  %s3409_s17 = smov [#allocation5]   ;;  %s3410_s19 = smov [#allocation2]  }
   0x3   :  { %s50_s18 = sshll.u32 %s3409_s17, 4  ;;  %s38_s20 = sshll.u32 %s3410_s19, 4  ;;  %s51_s18 = int_to_ptr.vmem [resolvable:$true] %s50_s18  ;;  %s3479_s20 = int_to_ptr.vmem [resolvable:$true] %s38_s20 }
   0x4   :  { %s3325_s23 = scalar_lea.hbm %s4208_s8, 2048 }
   0x5   :  { %p3326_p0 = scmp.ne.s32.totalorder %s4208_s8, %s3325_s23  ;;  %p3329_p1 = scmp.lt.u32.totalorder %s3325_s23, %s4208_s8 }
   0x7   :  { %p3331_p2 = pnand %p3329_p1, %p3326_p0 }
   0x9   :  { %3334 = shalt.err (!%p3331_p2)
}
   0xa   :  { %s3335_s28 = scalar_lea.vmem %s51_s18, 2048  ;;  %p3340_p4 = scmp.lt.s32.totalorder %s51_s18, %s51_s18 }
   0xb   :  { %p3336_p3 = scmp.ne.s32.totalorder %s51_s18, %s3335_s28  ;;  %p3341_p5 = scmp.lt.s32.totalorder %s3335_s28, %s3335_s28 }
   0xd   :  { %p3342_p6 = por %p3341_p5, %p3340_p4 }
   0xf   :  { %p3343_p7 = pnand %p3342_p6, %p3336_p3 }
  0x11   :  { %3346 = shalt.err (!%p3343_p7)
}
  0x12   :  { %s3411_s29 = smov 128   ;;  %s3412_s30 = smov 8  }
  0x13   :  { %56 = dma.hbm_to_vmem [thread:$0]  %s4208_s8, 2048, %s51_s18, [#allocation6], %s3411_s29, %s3411_s29, %s3412_s30  }
  0x14   :  { %s3347_s16 = scalar_lea.hbm %s4207_s7, 2048 }
  0x15   :  { %p3348_p8 = scmp.ne.s32.totalorder %s4207_s7, %s3347_s16  ;;  %p3351_p9 = scmp.lt.u32.totalorder %s3347_s16, %s4207_s7 }
  0x17   :  { %p3353_p10 = pnand %p3351_p9, %p3348_p8 }
  0x19   :  { %3356 = shalt.err (!%p3353_p10)
}
  0x1a   :  { %s3357_s23 = scalar_lea.vmem %s3479_s20, 2048  ;;  %p3362_p12 = scmp.lt.s32.totalorder %s3479_s20, %s3479_s20 }
  0x1b   :  { %p3358_p11 = scmp.ne.s32.totalorder %s3479_s20, %s3357_s23  ;;  %p3363_p13 = scmp.lt.s32.totalorder %s3357_s23, %s3357_s23 }
  0x1d   :  { %p3364_p0 = por %p3363_p13, %p3362_p12 }
  0x1f   :  { %p3365_p1 = pnand %p3364_p0, %p3358_p11 }
  0x21   :  { %3368 = shalt.err (!%p3365_p1)
}
  0x22   :  { %44 = dma.hbm_to_vmem [thread:$0]  %s4207_s7, 2048, %s3479_s20, [#allocation3], %s3411_s29, %s3411_s29, %s3412_s30  }
  0x23   :  { %s3413_s24 = smov [#allocation7]   ;;  %s3369_s28 = scalar_lea.hbm %s4209_s9, 2048 }
  0x24   :  { %s62_s25 = sshll.u32 %s3413_s24, 4  ;;  %p3370_p2 = scmp.ne.s32.totalorder %s4209_s9, %s3369_s28  ;;  %s63_s25 = int_to_ptr.vmem [resolvable:$true] %s62_s25 }
  0x25   :  { %p3373_p3 = scmp.lt.u32.totalorder %s3369_s28, %s4209_s9 }
  0x27   :  { %p3375_p4 = pnand %p3373_p3, %p3370_p2 }
  0x29   :  { %3378 = shalt.err (!%p3375_p4)
}
  0x2a   :  { %s3379_s16 = scalar_lea.vmem %s63_s25, 2048  ;;  %p3384_p6 = scmp.lt.s32.totalorder %s63_s25, %s63_s25 }
  0x2b   :  { %p3380_p5 = scmp.ne.s32.totalorder %s63_s25, %s3379_s16  ;;  %p3385_p7 = scmp.lt.s32.totalorder %s3379_s16, %s3379_s16 }
  0x2d   :  { %p3386_p8 = por %p3385_p7, %p3384_p6 }
  0x2f   :  { %p3387_p9 = pnand %p3386_p8, %p3380_p5 }
  0x31   :  { %3390 = shalt.err (!%p3387_p9)
}
  0x32   :  { %68 = dma.hbm_to_vmem [thread:$0]  %s4209_s9, 2048, %s63_s25, [#allocation6], %s3411_s29, %s3411_s29, %s3412_s30  }
  0x33   :  { %3403 = dma.done.wait [#allocation3], 2048  }
  0x34   :  { %3404 = vsyncadd [#allocation3], 4294965248 }
  0x35   :  { %3405 = dma.done.wait [#allocation6], 4096  }
  0x36   :  { %3406 = vsyncadd [#allocation6], 4294963200  ;;  %v84_v0 = vld [vmem:[%s4203_s3] sm:$0xff]  ;;  %v85_v1 = vld [vmem:[%s4203_s3 + $0x8] sm:$0xff]  ;;  %vm3415_vm0 = vmmov 0   ;;  %vm1050_vm1 = vcmask 130048  }
  0x37   :  { %v86_v2 = vld [vmem:[%s4203_s3 + $0x10] sm:$0xff]  ;;  %v3540_v3 = vpack.c.bf16 %v85_v1, %v84_v0  ;;  %v87_v4 = vld [vmem:[%s4203_s3 + $0x18] sm:$0xff]  ;;  %v88_v6 = vld [vmem:[%s4203_s3 + $0x20] sm:$0xff] }
  0x38   :  { %v3545_v5 = vpack.c.bf16 %v87_v4, %v86_v2  ;;  %v89_v7 = vld [vmem:[%s4203_s3 + $0x28] sm:$0xff]  ;;  %v90_v9 = vld [vmem:[%s4203_s3 + $0x30] sm:$0xff]  ;;  %v91_v10 = vld [vmem:[%s4203_s3 + $0x38] sm:$0xff] }
  0x39   :  { %2868 = vmatprep.subr.bf16.mxu0 %v3540_v3  ;;  %v3556_v8 = vpack.c.bf16 %v89_v7, %v88_v6  ;;  %v80_v11 = vld [vmem:[%s4201_s1] sm:$0xff]  ;;  %v101_v13 = vld [vmem:[%s4204_s4 + $0x8] sm:$0xff]  ;;  %v102_v14 = vld [vmem:[%s4204_s4 + $0x10] sm:$0xff]  ;;  %v3591_v20 = vpack.c.bf16 %v91_v10, %v90_v9 }
  0x3a   :  { %2870 = vmatpush3.bf16.msra.mxu0 %v3540_v3  ;;  %2381 = vmatprep.mubr.f32.mxu0 %v80_v11  ;;  %v100_v12 = vld [vmem:[%s4204_s4] sm:$0xff]  ;;  %v103_v16 = vld [vmem:[%s4204_s4 + $0x18] sm:$0xff]  ;;  %v105_v19 = vld [vmem:[%s4204_s4 + $0x28] sm:$0xff] }
  0x3b   :  { %2872 = vmatprep.subr.bf16.mxu0 %v3545_v5  ;;  %v3576_v15 = vpack.c.bf16 %v101_v13, %v100_v12  ;;  %v3582_v17 = vpack.c.bf16 %v103_v16, %v102_v14  ;;  %v104_v18 = vld [vmem:[%s4204_s4 + $0x20] sm:$0xff]  ;;  %v93_v22 = vld [vmem:[%s4203_s3 + $0x48] sm:$0xff]  ;;  %v106_v24 = vld [vmem:[%s4204_s4 + $0x30] sm:$0xff] }
  0x3c   :  { %v92_v21 = vld [vmem:[%s4203_s3 + $0x40] sm:$0xff]  ;;  %v3602_v23 = vpack.c.bf16 %v105_v19, %v104_v18  ;;  %v107_v25 = vld [vmem:[%s4204_s4 + $0x38] sm:$0xff]  ;;  %v94_v27 = vld [vmem:[%s4203_s3 + $0x50] sm:$0xff] }
  0x3d   :  { %2900 = vmatprep.subr.bf16.mxu1 %v3576_v15  ;;  %v3612_v26 = vpack.c.bf16 %v93_v22, %v92_v21  ;;  %v95_v28 = vld [vmem:[%s4203_s3 + $0x58] sm:$0xff]  ;;  %v3622_v29 = vpack.c.bf16 %v107_v25, %v106_v24  ;;  %v108_v30 = vld [vmem:[%s4204_s4 + $0x40] sm:$0xff]  ;;  %v109_v31 = vld [vmem:[%s4204_s4 + $0x48] sm:$0xff] }
  0x3e   :  { %2874 = vmatpush3.bf16.msra.mxu0 %v3545_v5  ;;  %2902 = vmatpush3.bf16.msra.mxu1 %v3576_v15  ;;  %v3632_v32 = vpack.c.bf16 %v95_v28, %v94_v27  ;;  %v96_v33 = vld [vmem:[%s4203_s3 + $0x60] sm:$0xff]  ;;  %v97_v34 = vld [vmem:[%s4203_s3 + $0x68] sm:$0xff]  ;;  %v3642_v35 = vpack.c.bf16 %v109_v31, %v108_v30  ;;  %v110_v36 = vld [vmem:[%s4204_s4 + $0x50] sm:$0xff] }
  0x3f   :  { %2876 = vmatprep.subr.bf16.mxu0 %v3556_v8  ;;  %2904 = vmatprep.subr.bf16.mxu1 %v3582_v17  ;;  %v111_v37 = vld [vmem:[%s4204_s4 + $0x58] sm:$0xff]  ;;  %v3652_v38 = vpack.c.bf16 %v97_v34, %v96_v33  ;;  %v98_v39 = vld [vmem:[%s4203_s3 + $0x70] sm:$0xff]  ;;  %v112_v42 = vld [vmem:[%s4204_s4 + $0x60] sm:$0xff] }
  0x40   :  { %v99_v40 = vld [vmem:[%s4203_s3 + $0x78] sm:$0xff]  ;;  %v3662_v41 = vpack.c.bf16 %v111_v37, %v110_v36  ;;  %v113_v43 = vld [vmem:[%s4204_s4 + $0x68] sm:$0xff]  ;;  %v114_v47 = vld [vmem:[%s4204_s4 + $0x70] sm:$0xff] }
  0x41   :  { %v3672_v44 = vpack.c.bf16 %v99_v40, %v98_v39  ;;  %v3676_v45 = vpack.c.bf16 %v113_v43, %v112_v42  ;;  %v81_v46 = vld [vmem:[%s4201_s1 + $0x8] sm:$0xff]  ;;  %v115_v48 = vld [vmem:[%s4204_s4 + $0x78] sm:$0xff]  ;;  %v116_v54 = vld [vmem:[%s4205_s5] sm:$0xff] }
  0x42   :  { %2878 = vmatpush3.bf16.msra.mxu0 %v3556_v8  ;;  %2906 = vmatpush3.bf16.msra.mxu1 %v3582_v17  ;;  %v3693_v49 = vpack.c.bf16 %v115_v48, %v114_v47  ;;  %v117_v55 = vld [vmem:[%s4205_s5 + $0x8] sm:$0xff]  ;;  %v118_v57 = vld [vmem:[%s4205_s5 + $0x10] sm:$0xff]  ;;  %v119_v58 = vld [vmem:[%s4205_s5 + $0x18] sm:$0xff] }
  0x43   :  { %2880 = vmatprep.subr.bf16.mxu0 %v3591_v20  ;;  %2908 = vmatprep.subr.bf16.mxu1 %v3602_v23  ;;  %v3708_v56 = vpack.c.bf16 %v117_v55, %v116_v54  ;;  %v3718_v59 = vpack.c.bf16 %v119_v58, %v118_v57  ;;  %v120_v60 = vld [vmem:[%s4205_s5 + $0x20] sm:$0xff]  ;;  %v121_v61 = vld [vmem:[%s4205_s5 + $0x28] sm:$0xff]  ;;  %v122_v63 = vld [vmem:[%s4205_s5 + $0x30] sm:$0xff] }
  0x44   :  { %v3728_v62 = vpack.c.bf16 %v121_v61, %v120_v60  ;;  %v123_v0 = vld [vmem:[%s4205_s5 + $0x38] sm:$0xff]  ;;  %v124_v2 = vld [vmem:[%s4205_s5 + $0x40] sm:$0xff]  ;;  %v125_v4 = vld [vmem:[%s4205_s5 + $0x48] sm:$0xff] }
  0x45   :  { %v3738_v1 = vpack.c.bf16 %v123_v0, %v122_v63  ;;  %v3748_v6 = vpack.c.bf16 %v125_v4, %v124_v2  ;;  %v126_v7 = vld [vmem:[%s4205_s5 + $0x50] sm:$0xff]  ;;  %v127_v9 = vld [vmem:[%s4205_s5 + $0x58] sm:$0xff]  ;;  %v128_v10 = vld [vmem:[%s4205_s5 + $0x60] sm:$0xff] }
  0x46   :  { %2882 = vmatpush3.bf16.msra.mxu0 %v3591_v20  ;;  %2910 = vmatpush3.bf16.msra.mxu1 %v3602_v23  ;;  %v3761_v11 = vpack.c.bf16 %v127_v9, %v126_v7  ;;  %v129_v12 = vld [vmem:[%s4205_s5 + $0x68] sm:$0xff]  ;;  %v130_v14 = vld [vmem:[%s4205_s5 + $0x70] sm:$0xff]  ;;  %v131_v16 = vld [vmem:[%s4205_s5 + $0x78] sm:$0xff]  ;;  %s2054_s5 = sshll.u32 %s4211_s11, 4  ;;  %s2055_s5 = int_to_ptr.vmem [resolvable:$true] %s2054_s5 }
  0x47   :  { %2884 = vmatprep.subr.bf16.mxu0 %v3612_v26  ;;  %2912 = vmatprep.subr.bf16.mxu1 %v3622_v29  ;;  %v3766_v13 = vpack.c.bf16 %v129_v12, %v128_v10  ;;  %v3777_v18 = vpack.c.bf16 %v131_v16, %v130_v14  ;;  %v82_v2 = vld [vmem:[%s4202_s2] sm:$0xff]  ;;  %v141_v7 = vld [vmem:[%s4206_s6 + $0x48] sm:$0xff]  ;;  %v142_v10 = vld [vmem:[%s4206_s6 + $0x50] sm:$0xff]  ;;  %s3391_s29 = scalar_lea.vmem %s2055_s5, 16  ;;  %p3396_p11 = scmp.lt.s32.totalorder %s2055_s5, %s2055_s5 }
  0x48   :  { %v144_v12 = vld [vmem:[%s4206_s6 + $0x60] sm:$0xff]  ;;  %v145_v14 = vld [vmem:[%s4206_s6 + $0x68] sm:$0xff]  ;;  %p3392_p10 = scmp.ne.s32.totalorder %s2055_s5, %s3391_s29  ;;  %p3397_p12 = scmp.lt.s32.totalorder %s3391_s29, %s3391_s29 }
  0x49   :  { %v3884_v16 = vpack.c.bf16 %v145_v14, %v144_v12 }
  0x4a   :  { %2886 = vmatpush3.bf16.msra.mxu0 %v3612_v26  ;;  %2914 = vmatpush3.bf16.msra.mxu1 %v3622_v29  ;;  %p3398_p13 = por %p3397_p12, %p3396_p11 }
  0x4b   :  { %2888 = vmatprep.subr.bf16.mxu0 %v3632_v32  ;;  %2916 = vmatprep.subr.bf16.mxu1 %v3642_v35 }
  0x4c   :  { %p3399_p0 = pnand %p3398_p13, %p3392_p10 }
  0x4e   :  { %2890 = vmatpush3.bf16.msra.mxu0 %v3632_v32  ;;  %2918 = vmatpush3.bf16.msra.mxu1 %v3642_v35 }
  0x4f   :  { %2892 = vmatprep.subr.bf16.mxu0 %v3652_v38  ;;  %2920 = vmatprep.subr.bf16.mxu1 %v3662_v41 }
  0x52   :  { %2894 = vmatpush3.bf16.msra.mxu0 %v3652_v38  ;;  %2922 = vmatpush3.bf16.msra.mxu1 %v3662_v41 }
  0x53   :  { %2896 = vmatprep.subr.bf16.mxu0 %v3672_v44  ;;  %2924 = vmatprep.subr.bf16.mxu1 %v3676_v45 }
  0x56   :  { %2898 = vmatpush3.bf16.msra.mxu0 %v3672_v44  ;;  %2926 = vmatpush3.bf16.msra.mxu1 %v3676_v45 }
  0x57   :  { %2928 = vmatprep.subr.bf16.mxu1 %v3693_v49  ;;  %2932 = vmatprep.subr.bf16.mxu0 %v3708_v56 }
  0x59   :  { %2382 = vmatmul.mubr.f32.vlgmr.msra.gmra.mrb[0].mxu0 %v81_v46 }
  0x5a   :  { %2930 = vmatpush3.bf16.msra.mxu1 %v3693_v49  ;;  %2934 = vmatpush3.bf16.msra.mxu0 %v3708_v56 }
  0x5b   :  { %2936 = vmatprep.subr.bf16.mxu0 %v3718_v59 }
  0x5e   :  { %2938 = vmatpush3.bf16.msra.mxu0 %v3718_v59 }
  0x5f   :  { %2940 = vmatprep.subr.bf16.mxu0 %v3728_v62 }
  0x62   :  { %2942 = vmatpush3.bf16.msra.mxu0 %v3728_v62 }
  0x63   :  { %2944 = vmatprep.subr.bf16.mxu0 %v3738_v1 }
  0x66   :  { %2946 = vmatpush3.bf16.msra.mxu0 %v3738_v1 }
  0x67   :  { %2948 = vmatprep.subr.bf16.mxu0 %v3748_v6 }
  0x6a   :  { %2950 = vmatpush3.bf16.msra.mxu0 %v3748_v6 }
  0x6b   :  { %2952 = vmatprep.subr.bf16.mxu0 %v3761_v11 }
  0x6e   :  { %2954 = vmatpush3.bf16.msra.mxu0 %v3761_v11 }
  0x6f   :  { %2956 = vmatprep.subr.bf16.mxu0 %v3766_v13 }
  0x72   :  { %2958 = vmatpush3.bf16.msra.mxu0 %v3766_v13 }
  0x73   :  { %2960 = vmatprep.subr.bf16.mxu0 %v3777_v18 }
  0x76   :  { %2962 = vmatpush3.bf16.msra.mxu0 %v3777_v18 }
  0x77   :  { %2996 = vmatprep.subr.bf16.mxu0 %v3540_v3 }
 0x12c   :  { %v2383_v50 = vpop.f32.mrb[0].mxu0 }
 0x12d   :  { %v3697_v51 = vpop.f32.mrb[1].mxu0  ;;  %v273_v53 = vmax.f32 %v2383_v50, 0.0 }
 0x12e   :  { %v272_v52 = vmax.f32 %v3697_v51, 0.0 }
 0x130   :  { %2416 = vmatprep.mubr.f32.mxu1 %v272_v52 }
 0x131   :  { %2417 = vmatmul.mubr.f32.vlgmr.msra.gmra.mrb[0].mxu1 %v273_v53 }
 0x204   :  { %v2418_v19 = vpop.f32.mrb[0].mxu1 }
 0x205   :  { %v359_v21 = vmul.f32 %v2418_v19, %v2418_v19  ;;  %v340_v22 = vpop.f32.mrb[1].mxu1 }
 0x206   :  { %v349_v24 = vadd.f32 %v2418_v19, %v340_v22  ;;  %v358_v25 = vmul.f32 %v340_v22, %v340_v22 }
 0x208   :  { %v350_v27 = vrot.slane %v349_v24, 4  ;;  %v360_v28 = vadd.f32 %v359_v21, %v358_v25 }
 0x20a   :  { %v351_v30 = vadd.f32 %v350_v27, %v349_v24  ;;  %v361_v31 = vrot.slane %v360_v28, 4 }
 0x20c   :  { %v352_v33 = vrot.slane %v351_v30, 2  ;;  %v362_v34 = vadd.f32 %v361_v31, %v360_v28 }
 0x20e   :  { %v353_v36 = vadd.f32 %v352_v33, %v351_v30  ;;  %v363_v37 = vrot.slane %v362_v34, 2 }
 0x210   :  { %v354_v39 = vrot.slane %v353_v36, 1  ;;  %v364_v40 = vadd.f32 %v363_v37, %v362_v34 }
 0x212   :  { %v355_v42 = vadd.f32 %v354_v39, %v353_v36  ;;  %v365_v43 = vrot.slane %v364_v40, 1 }
 0x214   :  { %v357_v46 = vmul.f32 0.0625, %v355_v42  ;;  %v366_v47 = vadd.f32 %v365_v43, %v364_v40 }
 0x216   :  { %v367_v48 = vmul.f32 0.0625, %v366_v47  ;;  %v368_v50 = vmul.f32 %v357_v46, %v357_v46  ;;  %v370_v53 = vsub.f32 %v340_v22, %v357_v46  ;;  %v371_v54 = vsub.f32 %v2418_v19, %v357_v46  ;;  %v147_v19 = vld [vmem:[%s4206_s6 + $0x78] sm:$0xff] }
 0x218   :  { %v369_v55 = vsub.f32 %v367_v48, %v368_v50 }
 0x21a   :  { %v372_v57 = vadd.f32 1e-05, %v369_v55 }
 0x21c   :  { %3295 = vrsqrt.f32 %v372_v57 }
 0x226   :  { %v3296_v58 = vpop.eup %3295 }
 0x227   :  { %v374_v60 = vmul.f32 %v3296_v58, %v370_v53  ;;  %v375_v61 = vmul.f32 %v3296_v58, %v371_v54 }
 0x229   :  { %v376_v63 = vmax.f32 %v374_v60, 0.0  ;;  %v377_v0 = vmax.f32 %v375_v61, 0.0 }
 0x22b   :  { %2451 = vmatprep.mubr.f32.mxu0 %v376_v63 }
 0x22c   :  { %2452 = vmatmul.mubr.f32.vlgmr.msra.gmra.mrb[2].mxu0 %v377_v0 }
 0x22d   :  { %2998 = vmatpush3.bf16.msra.mxu0 %v3540_v3  ;;  %2521 = vmatprep.mubr.f32.mxu0 %v82_v2  ;;  %v83_v3 = vld [vmem:[%s4202_s2 + $0x8] sm:$0xff] }
 0x22e   :  { %3000 = vmatprep.subr.bf16.mxu0 %v3545_v5 }
 0x231   :  { %3002 = vmatpush3.bf16.msra.mxu0 %v3545_v5  ;;  %v132_v5 = vld [vmem:[%s4206_s6] sm:$0xff] }
 0x232   :  { %3004 = vmatprep.subr.bf16.mxu0 %v3556_v8 }
 0x235   :  { %3006 = vmatpush3.bf16.msra.mxu0 %v3556_v8  ;;  %v133_v8 = vld [vmem:[%s4206_s6 + $0x8] sm:$0xff] }
 0x236   :  { %3008 = vmatprep.subr.bf16.mxu0 %v3591_v20 }
 0x239   :  { %3010 = vmatpush3.bf16.msra.mxu0 %v3591_v20  ;;  %v3826_v20 = vpack.c.bf16 %v133_v8, %v132_v5 }
 0x23a   :  { %3012 = vmatprep.subr.bf16.mxu0 %v3612_v26 }
 0x23b   :  { %2964 = vmatprep.subr.bf16.mxu1 %v3826_v20 }
 0x23c   :  { %2966 = vmatpush3.bf16.msra.mxu1 %v3826_v20 }
 0x23d   :  { %3014 = vmatpush3.bf16.msra.mxu0 %v3612_v26  ;;  %v134_v26 = vld [vmem:[%s4206_s6 + $0x10] sm:$0xff] }
 0x23e   :  { %3016 = vmatprep.subr.bf16.mxu0 %v3632_v32 }
 0x241   :  { %3018 = vmatpush3.bf16.msra.mxu0 %v3632_v32  ;;  %v135_v32 = vld [vmem:[%s4206_s6 + $0x18] sm:$0xff] }
 0x242   :  { %3020 = vmatprep.subr.bf16.mxu0 %v3652_v38 }
 0x245   :  { %3022 = vmatpush3.bf16.msra.mxu0 %v3652_v38  ;;  %v3836_v38 = vpack.c.bf16 %v135_v32, %v134_v26 }
 0x246   :  { %3024 = vmatprep.subr.bf16.mxu0 %v3672_v44 }
 0x247   :  { %2968 = vmatprep.subr.bf16.mxu1 %v3836_v38 }
 0x248   :  { %2970 = vmatpush3.bf16.msra.mxu1 %v3836_v38 }
 0x249   :  { %3026 = vmatpush3.bf16.msra.mxu0 %v3672_v44  ;;  %v136_v44 = vld [vmem:[%s4206_s6 + $0x20] sm:$0xff] }
 0x24a   :  { %3060 = vmatprep.subr.bf16.mxu0 %v3708_v56 }
 0x24c   :  { %2522 = vmatmul.mubr.f32.vlgmr.msra.gmra.mrb[4].mxu0 %v83_v3 }
 0x24d   :  { %3062 = vmatpush3.bf16.msra.mxu0 %v3708_v56  ;;  %v137_v56 = vld [vmem:[%s4206_s6 + $0x28] sm:$0xff] }
 0x24e   :  { %3064 = vmatprep.subr.bf16.mxu0 %v3718_v59 }
 0x251   :  { %3066 = vmatpush3.bf16.msra.mxu0 %v3718_v59  ;;  %v3846_v59 = vpack.c.bf16 %v137_v56, %v136_v44 }
 0x252   :  { %3068 = vmatprep.subr.bf16.mxu0 %v3728_v62 }
 0x253   :  { %2972 = vmatprep.subr.bf16.mxu1 %v3846_v59 }
 0x254   :  { %2974 = vmatpush3.bf16.msra.mxu1 %v3846_v59 }
 0x255   :  { %3070 = vmatpush3.bf16.msra.mxu0 %v3728_v62  ;;  %v138_v62 = vld [vmem:[%s4206_s6 + $0x30] sm:$0xff] }
 0x256   :  { %3072 = vmatprep.subr.bf16.mxu0 %v3738_v1 }
 0x259   :  { %3074 = vmatpush3.bf16.msra.mxu0 %v3738_v1  ;;  %v139_v1 = vld [vmem:[%s4206_s6 + $0x38] sm:$0xff] }
 0x25a   :  { %3076 = vmatprep.subr.bf16.mxu0 %v3748_v6  ;;  %v3856_v4 = vpack.c.bf16 %v139_v1, %v138_v62 }
 0x25c   :  { %2976 = vmatprep.subr.bf16.mxu1 %v3856_v4 }
 0x25d   :  { %3078 = vmatpush3.bf16.msra.mxu0 %v3748_v6  ;;  %2978 = vmatpush3.bf16.msra.mxu1 %v3856_v4  ;;  %v140_v6 = vld [vmem:[%s4206_s6 + $0x40] sm:$0xff] }
 0x25e   :  { %3080 = vmatprep.subr.bf16.mxu0 %v3761_v11  ;;  %v3866_v9 = vpack.c.bf16 %v141_v7, %v140_v6 }
 0x260   :  { %2980 = vmatprep.subr.bf16.mxu1 %v3866_v9 }
 0x261   :  { %3082 = vmatpush3.bf16.msra.mxu0 %v3761_v11  ;;  %2982 = vmatpush3.bf16.msra.mxu1 %v3866_v9  ;;  %v143_v11 = vld [vmem:[%s4206_s6 + $0x58] sm:$0xff] }
 0x262   :  { %3084 = vmatprep.subr.bf16.mxu0 %v3766_v13 }
 0x265   :  { %3086 = vmatpush3.bf16.msra.mxu0 %v3766_v13  ;;  %v3879_v13 = vpack.c.bf16 %v143_v11, %v142_v10 }
 0x266   :  { %3088 = vmatprep.subr.bf16.mxu0 %v3777_v18 }
 0x267   :  { %2984 = vmatprep.subr.bf16.mxu1 %v3879_v13 }
 0x268   :  { %2986 = vmatpush3.bf16.msra.mxu1 %v3879_v13 }
 0x269   :  { %3090 = vmatpush3.bf16.msra.mxu0 %v3777_v18  ;;  %v146_v18 = vld [vmem:[%s4206_s6 + $0x70] sm:$0xff]  ;;  %2988 = vmatprep.subr.bf16.mxu1 %v3884_v16 }
 0x26a   :  { %v3895_v21 = vpack.c.bf16 %v147_v19, %v146_v18 }
 0x26c   :  { %2990 = vmatpush3.bf16.msra.mxu1 %v3884_v16 }
 0x26d   :  { %2992 = vmatprep.subr.bf16.mxu1 %v3895_v21 }
 0x270   :  { %2994 = vmatpush3.bf16.msra.mxu1 %v3895_v21 }
 0x271   :  { %3028 = vmatprep.subr.bf16.mxu1 %v3576_v15 }
 0x2ff   :  { %v2453_v22 = vpop.f32.mrb[2].mxu0 }
 0x300   :  { %v462_v24 = vmul.f32 %v2453_v22, %v2453_v22  ;;  %v444_v25 = vpop.f32.mrb[3].mxu0 }
 0x301   :  { %v453_v27 = vadd.f32 %v2453_v22, %v444_v25  ;;  %v461_v28 = vmul.f32 %v444_v25, %v444_v25 }
 0x303   :  { %v454_v30 = vrot.slane %v453_v27, 4  ;;  %v463_v31 = vadd.f32 %v462_v24, %v461_v28 }
 0x305   :  { %v455_v33 = vadd.f32 %v454_v30, %v453_v27  ;;  %v464_v34 = vrot.slane %v463_v31, 4 }
 0x307   :  { %v456_v36 = vrot.slane %v455_v33, 2  ;;  %v465_v37 = vadd.f32 %v464_v34, %v463_v31 }
 0x309   :  { %v457_v39 = vadd.f32 %v456_v36, %v455_v33  ;;  %v466_v40 = vrot.slane %v465_v37, 2 }
 0x30b   :  { %v458_v42 = vrot.slane %v457_v39, 1  ;;  %v467_v43 = vadd.f32 %v466_v40, %v465_v37 }
 0x30d   :  { %v459_v46 = vadd.f32 %v458_v42, %v457_v39  ;;  %v468_v47 = vrot.slane %v467_v43, 1 }
 0x30f   :  { %v460_v48 = vmul.f32 0.0625, %v459_v46  ;;  %v469_v50 = vadd.f32 %v468_v47, %v467_v43 }
 0x311   :  { %v470_v53 = vmul.f32 0.0625, %v469_v50  ;;  %v471_v54 = vmul.f32 %v460_v48, %v460_v48  ;;  %v473_v55 = vsub.f32 %v444_v25, %v460_v48  ;;  %v474_v57 = vsub.f32 %v2453_v22, %v460_v48 }
 0x313   :  { %v472_v58 = vsub.f32 %v470_v53, %v471_v54 }
 0x315   :  { %v475_v60 = vadd.f32 1e-05, %v472_v58 }
 0x317   :  { %3297 = vrsqrt.f32 %v475_v60 }
 0x31f   :  { %v2523_v61 = vpop.f32.mrb[4].mxu0 }
 0x320   :  { %v3901_v63 = vpop.f32.mrb[5].mxu0 }
 0x321   :  { %v3298_v0 = vpop.eup %3297  ;;  %v657_v26 = vmax.f32 %v3901_v63, 0.0  ;;  %v184_v63 = vld [vmem:[#allocation7 + $0x20] sm:$0xff] }
 0x322   :  { %v477_v2 = vmul.f32 %v3298_v0, %v473_v55  ;;  %v478_v3 = vmul.f32 %v3298_v0, %v474_v57 }
 0x324   :  { %v479_v5 = vmax.f32 %v477_v2, 0.0  ;;  %v480_v8 = vmax.f32 %v478_v3, 0.0 }
 0x326   :  { %2486 = vmatprep.mubr.f32.mxu1 %v479_v5 }
 0x327   :  { %2487 = vmatmul.mubr.f32.vlgmr.msra.gmra.mrb[2].mxu1 %v480_v8 }
 0x328   :  { %3030 = vmatpush3.bf16.msra.mxu1 %v3576_v15  ;;  %2556 = vmatprep.mubr.f32.mxu1 %v657_v26  ;;  %v658_v15 = vmax.f32 %v2523_v61, 0.0 }
 0x329   :  { %3032 = vmatprep.subr.bf16.mxu1 %v3582_v17 }
 0x32c   :  { %3034 = vmatpush3.bf16.msra.mxu1 %v3582_v17 }
 0x32d   :  { %3036 = vmatprep.subr.bf16.mxu1 %v3602_v23 }
 0x330   :  { %3038 = vmatpush3.bf16.msra.mxu1 %v3602_v23 }
 0x331   :  { %3040 = vmatprep.subr.bf16.mxu1 %v3622_v29 }
 0x334   :  { %3042 = vmatpush3.bf16.msra.mxu1 %v3622_v29 }
 0x335   :  { %3044 = vmatprep.subr.bf16.mxu1 %v3642_v35 }
 0x338   :  { %3046 = vmatpush3.bf16.msra.mxu1 %v3642_v35 }
 0x339   :  { %3048 = vmatprep.subr.bf16.mxu1 %v3662_v41 }
 0x33c   :  { %3050 = vmatpush3.bf16.msra.mxu1 %v3662_v41 }
 0x33d   :  { %3052 = vmatprep.subr.bf16.mxu1 %v3676_v45 }
 0x340   :  { %3054 = vmatpush3.bf16.msra.mxu1 %v3676_v45 }
 0x341   :  { %3056 = vmatprep.subr.bf16.mxu1 %v3693_v49 }
 0x344   :  { %3058 = vmatpush3.bf16.msra.mxu1 %v3693_v49 }
 0x345   :  { %3092 = vmatprep.subr.bf16.mxu1 %v3826_v20 }
 0x347   :  { %2557 = vmatmul.mubr.f32.vlgmr.msra.gmra.mrb[4].mxu1 %v658_v15 }
 0x348   :  { %3094 = vmatpush3.bf16.msra.mxu1 %v3826_v20 }
 0x349   :  { %3096 = vmatprep.subr.bf16.mxu1 %v3836_v38 }
 0x34c   :  { %3098 = vmatpush3.bf16.msra.mxu1 %v3836_v38 }
 0x34d   :  { %3100 = vmatprep.subr.bf16.mxu1 %v3846_v59 }
 0x350   :  { %3102 = vmatpush3.bf16.msra.mxu1 %v3846_v59 }
 0x351   :  { %3104 = vmatprep.subr.bf16.mxu1 %v3856_v4 }
 0x354   :  { %3106 = vmatpush3.bf16.msra.mxu1 %v3856_v4 }
 0x355   :  { %3108 = vmatprep.subr.bf16.mxu1 %v3866_v9 }
 0x358   :  { %3110 = vmatpush3.bf16.msra.mxu1 %v3866_v9 }
 0x359   :  { %3112 = vmatprep.subr.bf16.mxu1 %v3879_v13 }
 0x35c   :  { %3114 = vmatpush3.bf16.msra.mxu1 %v3879_v13 }
 0x35d   :  { %3116 = vmatprep.subr.bf16.mxu1 %v3884_v16 }
 0x360   :  { %3118 = vmatpush3.bf16.msra.mxu1 %v3884_v16 }
 0x361   :  { %3120 = vmatprep.subr.bf16.mxu1 %v3895_v21 }
 0x364   :  { %3122 = vmatpush3.bf16.msra.mxu1 %v3895_v21 }
 0x3fa   :  { %v2488_v17 = vpop.f32.mrb[2].mxu1 }
 0x3fb   :  { %v565_v23 = vmul.f32 %v2488_v17, %v2488_v17  ;;  %v547_v29 = vpop.f32.mrb[3].mxu1 }
 0x3fc   :  { %v556_v35 = vadd.f32 %v2488_v17, %v547_v29  ;;  %v564_v41 = vmul.f32 %v547_v29, %v547_v29 }
 0x3fe   :  { %v557_v45 = vrot.slane %v556_v35, 4  ;;  %v566_v49 = vadd.f32 %v565_v23, %v564_v41 }
 0x400   :  { %v558_v20 = vadd.f32 %v557_v45, %v556_v35  ;;  %v567_v32 = vrot.slane %v566_v49, 4 }
 0x402   :  { %v559_v38 = vrot.slane %v558_v20, 2  ;;  %v568_v44 = vadd.f32 %v567_v32, %v566_v49 }
 0x404   :  { %v560_v56 = vadd.f32 %v559_v38, %v558_v20  ;;  %v569_v59 = vrot.slane %v568_v44, 2 }
 0x406   :  { %v561_v62 = vrot.slane %v560_v56, 1  ;;  %v570_v1 = vadd.f32 %v569_v59, %v568_v44 }
 0x408   :  { %v562_v4 = vadd.f32 %v561_v62, %v560_v56  ;;  %v571_v6 = vrot.slane %v570_v1, 1 }
 0x40a   :  { %v563_v7 = vmul.f32 0.0625, %v562_v4  ;;  %v572_v9 = vadd.f32 %v571_v6, %v570_v1 }
 0x40c   :  { %v573_v10 = vmul.f32 0.0625, %v572_v9  ;;  %v574_v11 = vmul.f32 %v563_v7, %v563_v7  ;;  %v576_v12 = vsub.f32 %v547_v29, %v563_v7  ;;  %v577_v13 = vsub.f32 %v2488_v17, %v563_v7 }
 0x40e   :  { %v575_v14 = vsub.f32 %v573_v10, %v574_v11 }
 0x410   :  { %v578_v16 = vadd.f32 1e-05, %v575_v14 }
 0x412   :  { %3299 = vrsqrt.f32 %v578_v16  ;;  %v3414_v16 = vmov 0.0|0.0  }
 0x413   :  { %3127 = vmatprep.subr.bf16.mxu1 %v3414_v16 }
 0x41a   :  { %v2558_v18 = vpop.f32.mrb[4].mxu1 }
 0x41b   :  { %v743_v19 = vmul.f32 %v2558_v18, %v2558_v18  ;;  %v725_v21 = vpop.f32.mrb[5].mxu1 }
 0x41c   :  { %v3300_v22 = vpop.eup %3299  ;;  %v734_v24 = vadd.f32 %v2558_v18, %v725_v21  ;;  %v742_v25 = vmul.f32 %v725_v21, %v725_v21 }
 0x41d   :  { %v580_v27 = vmul.f32 %v3300_v22, %v576_v12  ;;  %v581_v28 = vmul.f32 %v3300_v22, %v577_v13 }
 0x41e   :  { %v735_v30 = vrot.slane %v734_v24, 4  ;;  %v744_v31 = vadd.f32 %v743_v19, %v742_v25 }
 0x41f   :  { %v966_v33 = vadd.f32 %v581_v28, %v580_v27  ;;  %v974_v34 = vmul.f32 %v580_v27, %v580_v27  ;;  %v975_v36 = vmul.f32 %v581_v28, %v581_v28 }
 0x420   :  { %v736_v37 = vadd.f32 %v735_v30, %v734_v24  ;;  %v745_v39 = vrot.slane %v744_v31, 4 }
 0x421   :  { %v967_v40 = vrot.slane %v966_v33, 4  ;;  %v976_v42 = vadd.f32 %v975_v36, %v974_v34 }
 0x422   :  { %v737_v43 = vrot.slane %v736_v37, 2  ;;  %v746_v46 = vadd.f32 %v745_v39, %v744_v31 }
 0x423   :  { %v977_v47 = vrot.slane %v976_v42, 4  ;;  %v968_v48 = vadd.f32 %v967_v40, %v966_v33 }
 0x424   :  { %v738_v50 = vadd.f32 %v737_v43, %v736_v37  ;;  %v747_v53 = vrot.slane %v746_v46, 2 }
 0x425   :  { %v978_v54 = vadd.f32 %v977_v47, %v976_v42  ;;  %v969_v55 = vrot.slane %v968_v48, 2 }
 0x426   :  { %v739_v57 = vrot.slane %v738_v50, 1  ;;  %v748_v58 = vadd.f32 %v747_v53, %v746_v46 }
 0x427   :  { %v979_v60 = vrot.slane %v978_v54, 2  ;;  %v970_v61 = vadd.f32 %v969_v55, %v968_v48 }
 0x428   :  { %v740_v0 = vadd.f32 %v739_v57, %v738_v50  ;;  %v749_v2 = vrot.slane %v748_v58, 1 }
 0x429   :  { %v980_v3 = vadd.f32 %v979_v60, %v978_v54  ;;  %v971_v5 = vrot.slane %v970_v61, 1  ;;  %v149_v60 = vld [vmem:[#allocation2 + $0x8] sm:$0xff] }
 0x42a   :  { %v741_v8 = vmul.f32 0.0625, %v740_v0  ;;  %v750_v15 = vadd.f32 %v749_v2, %v748_v58  ;;  %v148_v58 = vld [vmem:[#allocation2] sm:$0xff] }
 0x42b   :  { %v972_v17 = vadd.f32 %v971_v5, %v970_v61  ;;  %v981_v23 = vrot.slane %v980_v3, 1  ;;  %v3938_v5 = vpack.c.bf16 %v149_v60, %v148_v58 }
 0x42c   :  { %v751_v29 = vmul.f32 0.0625, %v750_v15  ;;  %v752_v35 = vmul.f32 %v741_v8, %v741_v8  ;;  %v754_v41 = vsub.f32 %v725_v21, %v741_v8  ;;  %v755_v45 = vsub.f32 %v2558_v18, %v741_v8  ;;  %v150_v8 = vld [vmem:[#allocation2 + $0x10] sm:$0xff]  ;;  %v151_v15 = vld [vmem:[#allocation2 + $0x18] sm:$0xff] }
 0x42d   :  { %v973_v49 = vmul.f32 0.0625, %v972_v17  ;;  %v982_v20 = vadd.f32 %v981_v23, %v980_v3  ;;  %v3941_v17 = vpack.c.bf16 %v151_v15, %v150_v8  ;;  %v3416_v23 = vmov 0.0  }
 0x42e   :  { %v753_v32 = vsub.f32 %v751_v29, %v752_v35  ;;  %v152_v29 = vld [vmem:[#allocation2 + $0x20] sm:$0xff]  ;;  %v153_v35 = vld [vmem:[#allocation2 + $0x28] sm:$0xff] }
 0x42f   :  { %v983_v38 = vmul.f32 0.0625, %v982_v20  ;;  %v984_v44 = vmul.f32 %v973_v49, %v973_v49  ;;  %v986_v56 = vsub.f32 %v580_v27, %v973_v49  ;;  %v987_v59 = vsub.f32 %v581_v28, %v973_v49  ;;  %v155_v49 = vld [vmem:[#allocation2 + $0x38] sm:$0xff] }
 0x430   :  { %v756_v62 = vadd.f32 1e-05, %v753_v32  ;;  %v156_v32 = vld [vmem:[#allocation2 + $0x40] sm:$0xff] }
 0x431   :  { %v985_v1 = vsub.f32 %v983_v38, %v984_v44  ;;  %v157_v38 = vld [vmem:[#allocation2 + $0x48] sm:$0xff] }
 0x432   :  { %3301 = vrsqrt.f32 %v756_v62  ;;  %v3955_v44 = vpack.c.bf16 %v157_v38, %v156_v32 }
 0x433   :  { %v988_v4 = vadd.f32 1e-05, %v985_v1  ;;  %v160_v1 = vld [vmem:[#allocation2 + $0x60] sm:$0xff] }
 0x435   :  { %3303 = vrsqrt.f32 %v988_v4  ;;  %v161_v4 = vld [vmem:[#allocation2 + $0x68] sm:$0xff] }
 0x43c   :  { %v3302_v6 = vpop.eup %3301 }
 0x43d   :  { %v758_v7 = vmul.f32 %v3302_v6, %v754_v41  ;;  %v759_v9 = vmul.f32 %v3302_v6, %v755_v45  ;;  %v3947_v41 = vpack.c.bf16 %v153_v35, %v152_v29  ;;  %v154_v45 = vld [vmem:[#allocation2 + $0x30] sm:$0xff]  ;;  %v3963_v6 = vpack.c.bf16 %v161_v4, %v160_v1 }
 0x43e   :  { %v3951_v20 = vpack.c.bf16 %v155_v49, %v154_v45 }
 0x43f   :  { %v3304_v10 = vpop.eup %3303  ;;  %v760_v11 = vmax.f32 %v758_v7, 0.0  ;;  %v761_v12 = vmax.f32 %v759_v9, 0.0  ;;  %v162_v7 = vld [vmem:[#allocation2 + $0x70] sm:$0xff]  ;;  %v163_v9 = vld [vmem:[#allocation2 + $0x78] sm:$0xff] }
 0x440   :  { %v990_v13 = vmul.f32 %v3304_v10, %v986_v56  ;;  %v991_v14 = vmul.f32 %v3304_v10, %v987_v59  ;;  %v158_v56 = vld [vmem:[#allocation2 + $0x50] sm:$0xff]  ;;  %v159_v59 = vld [vmem:[#allocation2 + $0x58] sm:$0xff]  ;;  %v3967_v10 = vpack.c.bf16 %v163_v9, %v162_v7 }
 0x441   :  { %2591 = vmatprep.mubr.f32.mxu0 %v760_v11  ;;  %v3959_v62 = vpack.c.bf16 %v159_v59, %v158_v56 }
 0x442   :  { %2592 = vmatmul.mubr.f32.vlgmr.msra.gmra.mrb[6].mxu0 %v761_v12  ;;  %1018 = vxpose.xlu0.b32.start [1/2] (short) %v990_v13, 128 }
 0x446   :  { %1019 = vxpose.xlu0.b32.end [2/2] (short) %v991_v14, 128 }
 0x4c2   :  { %v1034_v11 = vpop.trf.xlu0 }
 0x4c3   :  { %2633 = vmatprep.mubr.msk.f32.mxu0 %vm1050_vm1, %v1034_v11 }
 0x515   :  { %v2593_v18 = vpop.f32.mrb[6].mxu0 }
 0x516   :  { %v846_v19 = vmul.f32 %v2593_v18, %v2593_v18  ;;  %v828_v21 = vpop.f32.mrb[7].mxu0 }
 0x517   :  { %v837_v22 = vadd.f32 %v2593_v18, %v828_v21  ;;  %v845_v24 = vmul.f32 %v828_v21, %v828_v21 }
 0x519   :  { %v838_v25 = vrot.slane %v837_v22, 4  ;;  %v847_v27 = vadd.f32 %v846_v19, %v845_v24 }
 0x51b   :  { %v839_v28 = vadd.f32 %v838_v25, %v837_v22  ;;  %v848_v30 = vrot.slane %v847_v27, 4 }
 0x51d   :  { %v840_v31 = vrot.slane %v839_v28, 2  ;;  %v849_v33 = vadd.f32 %v848_v30, %v847_v27 }
 0x51f   :  { %v841_v34 = vadd.f32 %v840_v31, %v839_v28  ;;  %v850_v36 = vrot.slane %v849_v33, 2 }
 0x521   :  { %v842_v37 = vrot.slane %v841_v34, 1  ;;  %v851_v39 = vadd.f32 %v850_v36, %v849_v33 }
 0x523   :  { %v843_v40 = vadd.f32 %v842_v37, %v841_v34  ;;  %v852_v42 = vrot.slane %v851_v39, 1 }
 0x525   :  { %v844_v43 = vmul.f32 0.0625, %v843_v40  ;;  %v853_v46 = vadd.f32 %v852_v42, %v851_v39 }
 0x527   :  { %v854_v47 = vmul.f32 0.0625, %v853_v46  ;;  %v855_v48 = vmul.f32 %v844_v43, %v844_v43  ;;  %v857_v50 = vsub.f32 %v828_v21, %v844_v43  ;;  %v858_v53 = vsub.f32 %v2593_v18, %v844_v43  ;;  %v3977_v46 = vpop.trf.xlu0 }
 0x529   :  { %v856_v54 = vsub.f32 %v854_v47, %v855_v48 }
 0x52b   :  { %v859_v55 = vadd.f32 1e-05, %v856_v54 }
 0x52d   :  { %3305 = vrsqrt.f32 %v859_v55 }
 0x537   :  { %v3306_v57 = vpop.eup %3305 }
 0x538   :  { %v861_v61 = vmul.f32 %v3306_v57, %v857_v50  ;;  %v862_v0 = vmul.f32 %v3306_v57, %v858_v53  ;;  %v3979_v50 = vpop.trf.xlu0 }
 0x53a   :  { %v863_v2 = vmax.f32 %v861_v61, 0.0  ;;  %v864_v3 = vmax.f32 %v862_v0, 0.0 }
 0x53c   :  { %2626 = vmatprep.mubr.f32.mxu1 %v863_v2  ;;  %v3981_v53 = vpop.trf.xlu0 }
 0x53d   :  { %2627 = vmatmul.mubr.f32.vlgmr.msra.gmra.mrb[6].mxu1 %v864_v3 }
 0x53e   :  { %3129 = vmatpush3.bf16.msra.mxu1 %v3938_v5  ;;  %2689 = vmatprep.mubr.msk.f32.mxu1 %vm3415_vm0, %v3416_v23 }
 0x53f   :  { %3130 = vmatprep.subr.bf16.mxu1 %v3414_v16 }
 0x540   :  { %v3985_v3 = vpop.trf.xlu0 }
 0x542   :  { %3132 = vmatpush3.bf16.msra.mxu1 %v3941_v17 }
 0x543   :  { %3133 = vmatprep.subr.bf16.mxu1 %v3414_v16 }
 0x544   :  { %v3987_v32 = vpop.trf.xlu0 }
 0x546   :  { %3135 = vmatpush3.bf16.msra.mxu1 %v3947_v41 }
 0x547   :  { %3136 = vmatprep.subr.bf16.mxu1 %v3414_v16 }
 0x548   :  { %v1040_v7 = vpop.trf.xlu0 }
 0x54a   :  { %3138 = vmatpush3.bf16.msra.mxu1 %v3951_v20 }
 0x54b   :  { %3139 = vmatprep.subr.bf16.mxu1 %v3414_v16 }
 0x54e   :  { %3141 = vmatpush3.bf16.msra.mxu1 %v3955_v44 }
 0x54f   :  { %3142 = vmatprep.subr.bf16.mxu1 %v3414_v16 }
 0x552   :  { %3144 = vmatpush3.bf16.msra.mxu1 %v3959_v62 }
 0x553   :  { %3145 = vmatprep.subr.bf16.mxu1 %v3414_v16 }
 0x556   :  { %3147 = vmatpush3.bf16.msra.mxu1 %v3963_v6 }
 0x557   :  { %3148 = vmatprep.subr.bf16.mxu1 %v3414_v16 }
 0x55a   :  { %3150 = vmatpush3.bf16.msra.mxu1 %v3967_v10 }
 0x55b   :  { %3175 = vmatprep.subr.bf16.mxu1 %v3414_v16 }
 0x55d   :  { %2690 = vmatmul.mubr.f32.vlgmr.msra.gmra.mrb[8].mxu1 %v272_v52 }
 0x55e   :  { %2759 = vmatprep.mubr.msk.f32.mxu1 %vm3415_vm0, %v3416_v23 }
 0x610   :  { %v2628_v12 = vpop.f32.mrb[6].mxu1 }
 0x611   :  { %v949_v13 = vmul.f32 %v2628_v12, %v2628_v12  ;;  %v931_v14 = vpop.f32.mrb[7].mxu1 }
 0x612   :  { %v940_v18 = vadd.f32 %v2628_v12, %v931_v14  ;;  %v948_v19 = vmul.f32 %v931_v14, %v931_v14 }
 0x614   :  { %v941_v21 = vrot.slane %v940_v18, 4  ;;  %v950_v22 = vadd.f32 %v949_v13, %v948_v19 }
 0x616   :  { %v942_v24 = vadd.f32 %v941_v21, %v940_v18  ;;  %v951_v25 = vrot.slane %v950_v22, 4 }
 0x618   :  { %v943_v27 = vrot.slane %v942_v24, 2  ;;  %v952_v28 = vadd.f32 %v951_v25, %v950_v22 }
 0x61a   :  { %v944_v51 = vadd.f32 %v943_v27, %v942_v24  ;;  %v953_v52 = vrot.slane %v952_v28, 2  ;;  %v1041_v27 = vpop.trf.xlu0 }
 0x61c   :  { %v945_v30 = vrot.slane %v944_v51, 1  ;;  %v954_v31 = vadd.f32 %v953_v52, %v952_v28 }
 0x61e   :  { %v946_v33 = vadd.f32 %v945_v30, %v944_v51  ;;  %v955_v34 = vrot.slane %v954_v31, 1 }
 0x620   :  { %v947_v36 = vmul.f32 0.0625, %v946_v33  ;;  %v956_v37 = vadd.f32 %v955_v34, %v954_v31  ;;  %v1042_v31 = vpop.trf.xlu0 }
 0x622   :  { %v957_v39 = vmul.f32 0.0625, %v956_v37  ;;  %v958_v40 = vmul.f32 %v947_v36, %v947_v36  ;;  %v960_v42 = vsub.f32 %v931_v14, %v947_v36  ;;  %v961_v43 = vsub.f32 %v2628_v12, %v947_v36 }
 0x624   :  { %v959_v47 = vsub.f32 %v957_v39, %v958_v40  ;;  %v1043_v39 = vpop.trf.xlu0 }
 0x626   :  { %v962_v48 = vadd.f32 1e-05, %v959_v47 }
 0x628   :  { %3307 = vrsqrt.f32 %v962_v48 }
 0x630   :  { %v3983_v54 = vpop.f32.mrb[8].mxu1 }
 0x631   :  { %v2691_v55 = vpop.f32.mrb[9].mxu1  ;;  %v1523_v12 = vrot.slane %v3983_v54, 4  ;;  %v1531_v13 = vmul.f32 %v3983_v54, %v3983_v54 }
 0x632   :  { %v3308_v57 = vpop.eup %3307 }
 0x633   :  { %v964_v58 = vmul.f32 %v3308_v57, %v960_v42  ;;  %v965_v60 = vmul.f32 %v3308_v57, %v961_v43  ;;  %v1524_v24 = vadd.f32 %v1523_v12, %v3983_v54  ;;  %v1532_v25 = vrot.slane %v1531_v13, 4  ;;  %v164_v57 = vld [vmem:[#allocation5] sm:$0xff] }
 0x635   :  { %v992_v61 = vadd.f32 %v965_v60, %v964_v58  ;;  %v1000_v0 = vmul.f32 %v964_v58, %v964_v58  ;;  %v1001_v2 = vmul.f32 %v965_v60, %v965_v60  ;;  %v1525_v52 = vrot.slane %v1524_v24, 2 }
 0x636   :  { %v1533_v30 = vadd.f32 %v1532_v25, %v1531_v13  ;;  %v175_v13 = vld [vmem:[#allocation5 + $0x58] sm:$0xff] }
 0x637   :  { %v993_v8 = vrot.slane %v992_v61, 4  ;;  %v1002_v15 = vadd.f32 %v1001_v2, %v1000_v0  ;;  %v1526_v33 = vadd.f32 %v1525_v52, %v1524_v24  ;;  %v178_v24 = vld [vmem:[#allocation5 + $0x70] sm:$0xff]  ;;  %v179_v25 = vld [vmem:[#allocation5 + $0x78] sm:$0xff] }
 0x638   :  { %v1534_v34 = vrot.slane %v1533_v30, 2  ;;  %v4046_v52 = vpack.c.bf16 %v179_v25, %v178_v24 }
 0x639   :  { %v994_v29 = vadd.f32 %v993_v8, %v992_v61  ;;  %v1003_v35 = vrot.slane %v1002_v15, 4  ;;  %v1527_v36 = vrot.slane %v1526_v33, 1  ;;  %v166_v8 = vld [vmem:[#allocation5 + $0x10] sm:$0xff] }
 0x63a   :  { %v1535_v37 = vadd.f32 %v1534_v34, %v1533_v30  ;;  %v188_v34 = vld [vmem:[#allocation7 + $0x40] sm:$0xff] }
 0x63b   :  { %v995_v45 = vrot.slane %v994_v29, 2  ;;  %v1004_v49 = vadd.f32 %v1003_v35, %v1002_v15  ;;  %v1528_v47 = vadd.f32 %v1527_v36, %v1526_v33  ;;  %v167_v15 = vld [vmem:[#allocation5 + $0x18] sm:$0xff]  ;;  %v189_v36 = vld [vmem:[#allocation7 + $0x48] sm:$0xff] }
 0x63c   :  { %v1536_v48 = vrot.slane %v1535_v37, 1 }
 0x63d   :  { %v996_v38 = vadd.f32 %v995_v45, %v994_v29  ;;  %v1005_v56 = vrot.slane %v1004_v49, 2  ;;  %v3993_v61 = vmul.f32 0.125, %v1528_v47  ;;  %v4005_v45 = vpack.c.bf16 %v167_v15, %v166_v8  ;;  %v193_v47 = vld [vmem:[#allocation7 + $0x68] sm:$0xff] }
 0x63e   :  { %v1537_v0 = vadd.f32 %v1536_v48, %v1535_v37  ;;  %v3188_v37 = vpack.c.bf16 %v189_v36, %v188_v34 }
 0x63f   :  { %v1006_v59 = vadd.f32 %v1005_v56, %v1004_v49  ;;  %v997_v1 = vrot.slane %v996_v38, 1  ;;  %v1539_v35 = vmul.f32 %v3993_v61, %v3993_v61  ;;  %v169_v56 = vld [vmem:[#allocation5 + $0x28] sm:$0xff] }
 0x640   :  { %v1538_v29 = vmul.f32 0.125, %v1537_v0 }
 0x641   :  { %v1007_v4 = vrot.slane %v1006_v59, 1  ;;  %v998_v9 = vadd.f32 %v997_v1, %v996_v38  ;;  %v168_v38 = vld [vmem:[#allocation5 + $0x20] sm:$0xff]  ;;  %v171_v1 = vld [vmem:[#allocation5 + $0x38] sm:$0xff] }
 0x643   :  { %v1008_v11 = vadd.f32 %v1007_v4, %v1006_v59  ;;  %v999_v14 = vmul.f32 0.0625, %v998_v9  ;;  %v4013_v59 = vpack.c.bf16 %v169_v56, %v168_v38 }
 0x645   :  { %v1009_v18 = vmul.f32 0.0625, %v1008_v11  ;;  %v1010_v19 = vmul.f32 %v999_v14, %v999_v14  ;;  %v1012_v21 = vsub.f32 %v964_v58, %v999_v14  ;;  %v1013_v22 = vsub.f32 %v965_v60, %v999_v14  ;;  %v165_v58 = vld [vmem:[#allocation5 + $0x8] sm:$0xff]  ;;  %v1044_v60 = vpop.trf.xlu0 }
 0x646   :  { %v3995_v2 = vpack.c.bf16 %v165_v58, %v164_v57  ;;  %v173_v11 = vld [vmem:[#allocation5 + $0x48] sm:$0xff]  ;;  %v195_v57 = vld [vmem:[#allocation7 + $0x78] sm:$0xff] }
 0x647   :  { %v1011_v28 = vsub.f32 %v1009_v18, %v1010_v19  ;;  %v176_v18 = vld [vmem:[#allocation5 + $0x60] sm:$0xff]  ;;  %v177_v19 = vld [vmem:[#allocation5 + $0x68] sm:$0xff] }
 0x649   :  { %v1014_v51 = vadd.f32 1e-05, %v1011_v28  ;;  %v1045_v49 = vpop.trf.xlu0  ;;  %v1541_v28 = vsub.f32 %v3983_v54, %v3993_v61 }
 0x64b   :  { %3309 = vrsqrt.f32 %v1014_v51 }
 0x64d   :  { %v1046_v4 = vpop.trf.xlu0 }
 0x655   :  { %v3310_v40 = vpop.eup %3309 }
 0x656   :  { %v1016_v42 = vmul.f32 %v3310_v40, %v1012_v21  ;;  %v1017_v43 = vmul.f32 %v3310_v40, %v1013_v22  ;;  %v4038_v22 = vpack.c.bf16 %v177_v19, %v176_v18  ;;  %v191_v40 = vld [vmem:[#allocation7 + $0x58] sm:$0xff] }
 0x658   :  { %v3123_v55 = vpack.c.bf16 %v1017_v43, %v1016_v42  ;;  %v192_v43 = vld [vmem:[#allocation7 + $0x60] sm:$0xff] }
 0x659   :  { %v3194_v48 = vpack.c.bf16 %v193_v47, %v192_v43 }
 0x65a   :  { %3124 = vmatprep.subr.bf16.mxu0 %v3123_v55 }
 0x65b   :  { %3126 = vmatpush3.bf16.msra.mxu0 %v3123_v55  ;;  %v194_v55 = vld [vmem:[#allocation7 + $0x70] sm:$0xff] }
 0x65c   :  { %3151 = vmatprep.subr.bf16.mxu0 %v3414_v16  ;;  %v3197_v58 = vpack.c.bf16 %v195_v57, %v194_v55 }
 0x65e   :  { %2634 = vmatmul.mubr.msk.f32.vlgmr.msra.gmra.mrb[8].mxu0 %vm1050_vm1, %v3977_v46  ;;  %v1540_v46 = vsub.f32 %v1538_v29, %v1539_v35 }
 0x65f   :  { %2636 = vmatprep.mubr.msk.f32.mxu0 %vm1050_vm1, %v3979_v50  ;;  %3153 = vmatpush3.bf16.msra.mxu0 %v3995_v2  ;;  %v170_v50 = vld [vmem:[#allocation5 + $0x30] sm:$0xff] }
 0x660   :  { %3154 = vmatprep.subr.bf16.mxu0 %v3414_v16  ;;  %v1542_v9 = vadd.f32 1e-05, %v1540_v46 }
 0x662   :  { %2637 = vmatmul.mubr.msk.f32.gmra.mrb[10].mxu0 %vm1050_vm1, %v3981_v53  ;;  %v4020_v53 = vpack.c.bf16 %v171_v1, %v170_v50  ;;  %3311 = vrsqrt.f32 %v1542_v9 }
 0x663   :  { %2639 = vmatprep.mubr.msk.f32.mxu0 %vm1050_vm1, %v3985_v3  ;;  %3156 = vmatpush3.bf16.msra.mxu0 %v4005_v45  ;;  %v172_v3 = vld [vmem:[#allocation5 + $0x40] sm:$0xff] }
 0x664   :  { %3157 = vmatprep.subr.bf16.mxu0 %v3414_v16  ;;  %v4026_v12 = vpack.c.bf16 %v173_v11, %v172_v3 }
 0x666   :  { %2640 = vmatmul.mubr.msk.f32.gmra.mrb[12].mxu0 %vm1050_vm1, %v3987_v32  ;;  %v1047_v32 = vpop.trf.xlu0 }
 0x667   :  { %2642 = vmatprep.mubr.msk.f32.mxu0 %vm1050_vm1, %v1040_v7  ;;  %3159 = vmatpush3.bf16.msra.mxu0 %v4013_v59  ;;  %v174_v7 = vld [vmem:[#allocation5 + $0x50] sm:$0xff] }
 0x668   :  { %3160 = vmatprep.subr.bf16.mxu0 %v3414_v16  ;;  %v4032_v14 = vpack.c.bf16 %v175_v13, %v174_v7 }
 0x66a   :  { %2643 = vmatmul.mubr.msk.f32.gmra.mrb[14].mxu0 %vm1050_vm1, %v1041_v27  ;;  %v1048_v21 = vpop.trf.xlu0 }
 0x66b   :  { %2645 = vmatprep.mubr.msk.f32.mxu0 %vm1050_vm1, %v1042_v31  ;;  %3162 = vmatpush3.bf16.msra.mxu0 %v4020_v53  ;;  %v187_v31 = vld [vmem:[#allocation7 + $0x38] sm:$0xff] }
 0x66c   :  { %3163 = vmatprep.subr.bf16.mxu0 %v3414_v16  ;;  %v3312_v27 = vpop.eup %3311 }
 0x66d   :  { %v1544_v30 = vmul.f32 %v3312_v27, %v1541_v28 }
 0x66e   :  { %2646 = vmatmul.mubr.msk.f32.gmra.mrb[16].mxu0 %vm1050_vm1, %v1043_v39  ;;  %v1049_v51 = vpop.trf.xlu0  ;;  %v190_v39 = vld [vmem:[#allocation7 + $0x50] sm:$0xff] }
 0x66f   :  { %2648 = vmatprep.mubr.msk.f32.mxu0 %vm1050_vm1, %v1044_v60  ;;  %3165 = vmatpush3.bf16.msra.mxu0 %v4026_v12  ;;  %v1545_v54 = vmax.f32 %v1544_v30, 0.0  ;;  %v3191_v42 = vpack.c.bf16 %v191_v40, %v190_v39  ;;  %v1260_v60 = vlaneseq }
 0x670   :  { %3166 = vmatprep.subr.bf16.mxu0 %v3414_v16 }
 0x671   :  { %v4091_v61 = vshrl.u32 %v1260_v60, 7  ;;  %v4094_v8 = vand.u32 127, %v1260_v60 }
 0x672   :  { %2649 = vmatmul.mubr.msk.f32.gmra.mrb[18].mxu0 %vm1050_vm1, %v1045_v49 }
 0x673   :  { %2651 = vmatprep.mubr.msk.f32.mxu0 %vm1050_vm1, %v1046_v4  ;;  %3168 = vmatpush3.bf16.msra.mxu0 %v4032_v14  ;;  %v1262_v0 = vadd.s32 8, %v4091_v61  ;;  %v1263_v29 = vadd.s32 16, %v4091_v61  ;;  %vm1279_vm3 = vcmp.eq.s32.totalorder %v4091_v61, %v4094_v8  ;;  %v1264_v50 = vadd.s32 24, %v4091_v61 }
 0x674   :  { %3169 = vmatprep.subr.bf16.mxu0 %v3414_v16  ;;  %v1266_v3 = vadd.s32 40, %v4091_v61  ;;  %v1265_v18 = vadd.s32 32, %v4091_v61  ;;  %v1268_v27 = vadd.s32 56, %v4091_v61  ;;  %vm1924_vm10 = vcmp.lt.s32.totalorder %v4094_v8, 10 }
 0x675   :  { %vm1280_vm2 = vcmp.eq.s32.totalorder %v1262_v0, %v4094_v8  ;;  %vm1281_vm4 = vcmp.eq.s32.totalorder %v1263_v29, %v4094_v8  ;;  %vm1282_vm5 = vcmp.eq.s32.totalorder %v1264_v50, %v4094_v8  ;;  %vm1927_vm15 = vcmp.lt.s32.totalorder %v4091_v61, 4 }
 0x676   :  { %2652 = vmatmul.mubr.msk.f32.gmra.mrb[20].mxu0 %vm1050_vm1, %v1047_v32  ;;  %vm1284_vm6 = vcmp.eq.s32.totalorder %v1266_v3, %v4094_v8  ;;  %vm1283_vm7 = vcmp.eq.s32.totalorder %v1265_v18, %v4094_v8  ;;  %vm1286_vm8 = vcmp.eq.s32.totalorder %v1268_v27, %v4094_v8 }
 0x677   :  { %2654 = vmatprep.mubr.msk.f32.mxu0 %vm1050_vm1, %v1048_v21  ;;  %3171 = vmatpush3.bf16.msra.mxu0 %v4038_v22 }
 0x678   :  { %3172 = vmatprep.subr.bf16.mxu0 %v3414_v16 }
 0x67a   :  { %2655 = vmatmul.mubr.msk.f32.gmra.mrb[22].mxu0 %vm1050_vm1, %v1049_v51 }
 0x67b   :  { %3174 = vmatpush3.bf16.msra.mxu0 %v4046_v52  ;;  %2724 = vmatprep.mubr.msk.f32.mxu0 %vm3415_vm0, %v3416_v23 }
 0x67c   :  { %3199 = vmatprep.subr.bf16.mxu0 %v3414_v16 }
 0x67e   :  { %2725 = vmatmul.mubr.f32.vlgmr.msra.gmra.mrb[24].mxu0 %v1545_v54 }
 0x67f   :  { %3201 = vmatpush3.bf16.msra.mxu0 %v3938_v5  ;;  %2794 = vmatprep.mubr.msk.f32.mxu0 %vm3415_vm0, %v3416_v23  ;;  %v180_v5 = vld [vmem:[#allocation7] sm:$0xff] }
 0x680   :  { %3202 = vmatprep.subr.bf16.mxu0 %v3414_v16 }
 0x683   :  { %3204 = vmatpush3.bf16.msra.mxu0 %v3941_v17  ;;  %v181_v17 = vld [vmem:[#allocation7 + $0x8] sm:$0xff] }
 0x684   :  { %3205 = vmatprep.subr.bf16.mxu0 %v3414_v16 }
 0x687   :  { %3207 = vmatpush3.bf16.msra.mxu0 %v3947_v41  ;;  %v3176_v41 = vpack.c.bf16 %v181_v17, %v180_v5 }
 0x688   :  { %3208 = vmatprep.subr.bf16.mxu0 %v3414_v16 }
 0x689   :  { %3177 = vmatpush3.bf16.msra.mxu1 %v3176_v41 }
 0x68a   :  { %3178 = vmatprep.subr.bf16.mxu1 %v3414_v16 }
 0x68b   :  { %3210 = vmatpush3.bf16.msra.mxu0 %v3951_v20  ;;  %v182_v20 = vld [vmem:[#allocation7 + $0x10] sm:$0xff] }
 0x68c   :  { %3211 = vmatprep.subr.bf16.mxu0 %v3414_v16 }
 0x68f   :  { %3213 = vmatpush3.bf16.msra.mxu0 %v3955_v44  ;;  %v183_v44 = vld [vmem:[#allocation7 + $0x18] sm:$0xff] }
 0x690   :  { %3214 = vmatprep.subr.bf16.mxu0 %v3414_v16 }
 0x693   :  { %3216 = vmatpush3.bf16.msra.mxu0 %v3959_v62  ;;  %v3179_v62 = vpack.c.bf16 %v183_v44, %v182_v20  ;;  %v1267_v20 = vadd.s32 48, %v4091_v61 }
 0x694   :  { %3217 = vmatprep.subr.bf16.mxu0 %v3414_v16 }
 0x695   :  { %3180 = vmatpush3.bf16.msra.mxu1 %v3179_v62  ;;  %vm1285_vm9 = vcmp.eq.s32.totalorder %v1267_v20, %v4094_v8 }
 0x696   :  { %3181 = vmatprep.subr.bf16.mxu1 %v3414_v16 }
 0x697   :  { %3219 = vmatpush3.bf16.msra.mxu0 %v3963_v6 }
 0x698   :  { %3220 = vmatprep.subr.bf16.mxu0 %v3414_v16 }
 0x69b   :  { %3222 = vmatpush3.bf16.msra.mxu0 %v3967_v10  ;;  %v186_v10 = vld [vmem:[#allocation7 + $0x30] sm:$0xff] }
 0x69c   :  { %3247 = vmatprep.subr.bf16.mxu0 %v3414_v16  ;;  %v3185_v33 = vpack.c.bf16 %v187_v31, %v186_v10 }
 0x69e   :  { %2795 = vmatmul.mubr.f32.vlgmr.msra.gmra.mrb[26].mxu0 %v657_v26  ;;  %v185_v26 = vld [vmem:[#allocation7 + $0x28] sm:$0xff] }
 0x69f   :  { %2864 = vmatprep.mubr.msk.f32.mxu0 %vm3415_vm0, %v3416_v23  ;;  %3249 = vmatpush3.bf16.msra.mxu0 %v3176_v41  ;;  %v3182_v6 = vpack.c.bf16 %v185_v26, %v184_v63 }
 0x6a0   :  { %3250 = vmatprep.subr.bf16.mxu0 %v3414_v16 }
 0x6a1   :  { %3183 = vmatpush3.bf16.msra.mxu1 %v3182_v6 }
 0x6a2   :  { %3184 = vmatprep.subr.bf16.mxu1 %v3414_v16 }
 0x6a3   :  { %3252 = vmatpush3.bf16.msra.mxu0 %v3179_v62 }
 0x6a4   :  { %3253 = vmatprep.subr.bf16.mxu0 %v3414_v16 }
 0x6a5   :  { %3186 = vmatpush3.bf16.msra.mxu1 %v3185_v33 }
 0x6a6   :  { %3187 = vmatprep.subr.bf16.mxu1 %v3414_v16 }
 0x6a7   :  { %3255 = vmatpush3.bf16.msra.mxu0 %v3182_v6 }
 0x6a8   :  { %3256 = vmatprep.subr.bf16.mxu0 %v3414_v16 }
 0x6a9   :  { %3189 = vmatpush3.bf16.msra.mxu1 %v3188_v37 }
 0x6aa   :  { %3190 = vmatprep.subr.bf16.mxu1 %v3414_v16 }
 0x6ab   :  { %3258 = vmatpush3.bf16.msra.mxu0 %v3185_v33 }
 0x6ac   :  { %3259 = vmatprep.subr.bf16.mxu0 %v3414_v16 }
 0x6ad   :  { %3192 = vmatpush3.bf16.msra.mxu1 %v3191_v42 }
 0x6ae   :  { %3193 = vmatprep.subr.bf16.mxu1 %v3414_v16 }
 0x6af   :  { %3261 = vmatpush3.bf16.msra.mxu0 %v3188_v37 }
 0x6b0   :  { %3262 = vmatprep.subr.bf16.mxu0 %v3414_v16 }
 0x6b1   :  { %3195 = vmatpush3.bf16.msra.mxu1 %v3194_v48 }
 0x6b2   :  { %3196 = vmatprep.subr.bf16.mxu1 %v3414_v16 }
 0x6b3   :  { %3264 = vmatpush3.bf16.msra.mxu0 %v3191_v42 }
 0x6b4   :  { %3265 = vmatprep.subr.bf16.mxu0 %v3414_v16 }
 0x6b5   :  { %3198 = vmatpush3.bf16.msra.mxu1 %v3197_v58 }
 0x6b6   :  { %3223 = vmatprep.subr.bf16.mxu1 %v3414_v16 }
 0x6b7   :  { %3267 = vmatpush3.bf16.msra.mxu0 %v3194_v48 }
 0x6b8   :  { %3268 = vmatprep.subr.bf16.mxu0 %v3414_v16 }
 0x6bb   :  { %3270 = vmatpush3.bf16.msra.mxu0 %v3197_v58 }
 0x731   :  { %v2635_v15 = vpop.f32.mrb[8].mxu0 }
 0x732   :  { %v1245_v35 = vmul.f32 0.0625, %v2635_v15  ;;  %v1165_v49 = vpop.f32.mrb[9].mxu0 }
 0x733   :  { %v1244_v38 = vmul.f32 0.0625, %v1165_v49 }
 0x734   :  { %v1328_v56 = vmul.f32 %v1245_v35, %v1245_v35  ;;  %v1408_v46 = vsel %vm1280_vm2, %v1245_v35, 0.0 }
 0x735   :  { %v1327_v1 = vmul.f32 %v1244_v38, %v1244_v38  ;;  %v1407_v4 = vsel %vm1279_vm3, %v1244_v38, 0.0  ;;  %v2638_v9 = vpop.f32.mrb[10].mxu0 }
 0x736   :  { %v1368_v11 = vsel %vm1280_vm2, %v1328_v56, 0.0  ;;  %v1423_v32 = vadd.f32 %v1408_v46, %v1407_v4  ;;  %v1247_v7 = vmul.f32 0.0625, %v2638_v9  ;;  %v1175_v13 = vpop.f32.mrb[11].mxu0  ;;  %vm1930_vm2 = vcmp.ge.s32.totalorder %v4091_v61, 4 }
 0x737   :  { %v1343_v19 = vadd.f32 %v1328_v56, %v1327_v1  ;;  %v1367_v21 = vsel %vm1279_vm3, %v1327_v1, 0.0  ;;  %v1246_v24 = vmul.f32 0.0625, %v1175_v13 }
 0x738   :  { %v1383_v25 = vadd.f32 %v1368_v11, %v1367_v21  ;;  %v1330_v28 = vmul.f32 %v1247_v7, %v1247_v7  ;;  %v1410_v44 = vsel %vm1282_vm5, %v1247_v7, 0.0 }
 0x739   :  { %v1329_v51 = vmul.f32 %v1246_v24, %v1246_v24  ;;  %v1409_v30 = vsel %vm1281_vm4, %v1246_v24, 0.0  ;;  %v2641_v54 = vpop.f32.mrb[12].mxu0 }
 0x73a   :  { %v1424_v5 = vadd.f32 %v1423_v32, %v1409_v30  ;;  %v1249_v17 = vmul.f32 0.0625, %v2641_v54  ;;  %v1185_v41 = vpop.f32.mrb[13].mxu0  ;;  %v1370_v33 = vsel %vm1282_vm5, %v1330_v28, 0.0 }
 0x73b   :  { %v1344_v62 = vadd.f32 %v1343_v19, %v1329_v51  ;;  %v1369_v63 = vsel %vm1281_vm4, %v1329_v51, 0.0  ;;  %v1248_v26 = vmul.f32 0.0625, %v1185_v41 }
 0x73c   :  { %v1384_v6 = vadd.f32 %v1383_v25, %v1369_v63  ;;  %v1332_v10 = vmul.f32 %v1249_v17, %v1249_v17  ;;  %v1425_v31 = vadd.f32 %v1424_v5, %v1410_v44  ;;  %v1412_v48 = vsel %vm1284_vm6, %v1249_v17, 0.0 }
 0x73d   :  { %v1331_v34 = vmul.f32 %v1248_v26, %v1248_v26  ;;  %v1345_v36 = vadd.f32 %v1344_v62, %v1330_v28  ;;  %v1411_v37 = vsel %vm1283_vm7, %v1248_v26, 0.0  ;;  %v2644_v39 = vpop.f32.mrb[14].mxu0 }
 0x73e   :  { %v1385_v40 = vadd.f32 %v1384_v6, %v1370_v33  ;;  %v1426_v42 = vadd.f32 %v1425_v31, %v1411_v37  ;;  %v1251_v43 = vmul.f32 0.0625, %v2644_v39  ;;  %v1195_v47 = vpop.f32.mrb[15].mxu0  ;;  %v1372_v60 = vsel %vm1284_vm6, %v1332_v10, 0.0 }
 0x73f   :  { %v1346_v55 = vadd.f32 %v1345_v36, %v1331_v34  ;;  %v1371_v57 = vsel %vm1283_vm7, %v1331_v34, 0.0  ;;  %v1250_v58 = vmul.f32 0.0625, %v1195_v47 }
 0x740   :  { %v1386_v0 = vadd.f32 %v1385_v40, %v1371_v57  ;;  %v1427_v15 = vadd.f32 %v1426_v42, %v1412_v48  ;;  %v1334_v29 = vmul.f32 %v1251_v43, %v1251_v43  ;;  %v1414_v1 = vsel %vm1286_vm8, %v1251_v43, 0.0 }
 0x741   :  { %v1333_v35 = vmul.f32 %v1250_v58, %v1250_v58  ;;  %v1347_v49 = vadd.f32 %v1346_v55, %v1332_v10  ;;  %v1413_v38 = vsel %vm1285_vm9, %v1250_v58, 0.0  ;;  %v2647_v56 = vpop.f32.mrb[16].mxu0 }
 0x742   :  { %v1205_v46 = vpop.f32.mrb[17].mxu0  ;;  %v1387_v50 = vadd.f32 %v1386_v0, %v1372_v60  ;;  %v1428_v4 = vadd.f32 %v1427_v15, %v1413_v38  ;;  %v1253_v11 = vmul.f32 0.0625, %v2647_v56  ;;  %v1374_v24 = vsel %vm1286_vm8, %v1334_v29, 0.0 }
 0x743   :  { %v1348_v9 = vadd.f32 %v1347_v49, %v1333_v35  ;;  %v1252_v32 = vmul.f32 0.0625, %v1205_v46  ;;  %v1373_v3 = vsel %vm1285_vm9, %v1333_v35, 0.0 }
 0x744   :  { %v1388_v7 = vadd.f32 %v1387_v50, %v1373_v3  ;;  %v4139_v13 = vadd.f32 %v1428_v4, %v1414_v1  ;;  %v1336_v51 = vmul.f32 %v1253_v11, %v1253_v11 }
 0x745   :  { %v1335_v18 = vmul.f32 %v1252_v32, %v1252_v32  ;;  %v1349_v19 = vadd.f32 %v1348_v9, %v1334_v29  ;;  %v2650_v21 = vpop.f32.mrb[18].mxu0  ;;  %v2081_v32 = vld [vmem:[%s4210_s10] ss:$0 sm:$0xff] }
 0x746   :  { %v1215_v25 = vpop.f32.mrb[19].mxu0  ;;  %v4143_v28 = vadd.f32 %v1388_v7, %v1374_v24  ;;  %v1255_v54 = vmul.f32 0.0625, %v2650_v21 }
 0x747   :  { %v1350_v30 = vadd.f32 %v1349_v19, %v1335_v18  ;;  %v1254_v5 = vmul.f32 0.0625, %v1215_v25 }
 0x748   :  { %v1338_v62 = vmul.f32 %v1255_v54, %v1255_v54 }
 0x749   :  { %v1337_v17 = vmul.f32 %v1254_v5, %v1254_v5  ;;  %v1351_v41 = vadd.f32 %v1350_v30, %v1336_v51  ;;  %v2653_v20 = vpop.f32.mrb[20].mxu0 }
 0x74a   :  { %v1225_v44 = vpop.f32.mrb[21].mxu0  ;;  %v1257_v26 = vmul.f32 0.0625, %v2653_v20 }
 0x74b   :  { %v1352_v63 = vadd.f32 %v1351_v41, %v1337_v17  ;;  %v1256_v6 = vmul.f32 0.0625, %v1225_v44 }
 0x74c   :  { %v1340_v34 = vmul.f32 %v1257_v26, %v1257_v26 }
 0x74d   :  { %v1339_v10 = vmul.f32 %v1256_v6, %v1256_v6  ;;  %v1353_v31 = vadd.f32 %v1352_v63, %v1338_v62  ;;  %v2656_v33 = vpop.f32.mrb[22].mxu0 }
 0x74e   :  { %v1235_v27 = vpop.f32.mrb[23].mxu0  ;;  %v1259_v37 = vmul.f32 0.0625, %v2656_v33 }
 0x74f   :  { %v1354_v36 = vadd.f32 %v1353_v31, %v1339_v10  ;;  %v1258_v39 = vmul.f32 0.0625, %v1235_v27 }
 0x750   :  { %v1342_v48 = vmul.f32 %v1259_v37, %v1259_v37  ;;  %v3417_v37 = vmov 0  }
 0x751   :  { %v1341_v40 = vmul.f32 %v1258_v39, %v1258_v39  ;;  %v1355_v42 = vadd.f32 %v1354_v36, %v1340_v34  ;;  %v1612_v43 = vpop.f32.mrb[24].mxu0  ;;  %3293 = vset.pattern.permute.xlu1 %v3417_v37  ;;  %3294 = vset.pattern.permute.xlu0 %v3417_v37 }
 0x752   :  { %v2726_v47 = vpop.f32.mrb[25].mxu0  ;;  %2760 = vmatmul.mubr.f32.vlgmr.msra.gmra.mrb[10].mxu1 %v1612_v43 }
 0x753   :  { %v1356_v55 = vadd.f32 %v1355_v42, %v1341_v40  ;;  %3225 = vmatpush3.bf16.msra.mxu1 %v3995_v2  ;;  %2829 = vmatprep.mubr.msk.f32.mxu1 %vm3415_vm0, %v3416_v23  ;;  %v1933_v47 = vld [vmem:[%s4200_s0] sm:$0xff]  ;;  %vm1969_vm0 = vcmask 7168  }
 0x754   :  { %3226 = vmatprep.subr.bf16.mxu1 %v3414_v16 }
 0x755   :  { %v4149_v57 = vadd.f32 %v1356_v55, %v1342_v48 }
 0x757   :  { %3228 = vmatpush3.bf16.msra.mxu1 %v4005_v45 }
 0x758   :  { %3229 = vmatprep.subr.bf16.mxu1 %v3414_v16 }
 0x75b   :  { %3231 = vmatpush3.bf16.msra.mxu1 %v4013_v59 }
 0x75c   :  { %3232 = vmatprep.subr.bf16.mxu1 %v3414_v16 }
 0x75f   :  { %3234 = vmatpush3.bf16.msra.mxu1 %v4020_v53 }
 0x760   :  { %3235 = vmatprep.subr.bf16.mxu1 %v3414_v16 }
 0x763   :  { %3237 = vmatpush3.bf16.msra.mxu1 %v4026_v12 }
 0x764   :  { %3238 = vmatprep.subr.bf16.mxu1 %v3414_v16 }
 0x767   :  { %3240 = vmatpush3.bf16.msra.mxu1 %v4032_v14 }
 0x768   :  { %3241 = vmatprep.subr.bf16.mxu1 %v3414_v16 }
 0x76b   :  { %3243 = vmatpush3.bf16.msra.mxu1 %v4038_v22 }
 0x76c   :  { %3244 = vmatprep.subr.bf16.mxu1 %v3414_v16 }
 0x76f   :  { %3246 = vmatpush3.bf16.msra.mxu1 %v4046_v52 }
 0x771   :  { %v1758_v2 = vpop.f32.mrb[26].mxu0 }
 0x772   :  { %v1762_v45 = vrot.slane %v1758_v2, 4  ;;  %v1769_v59 = vmul.f32 %v1758_v2, %v1758_v2  ;;  %v2796_v53 = vpop.f32.mrb[27].mxu0 }
 0x774   :  { %v1763_v58 = vadd.f32 %v1762_v45, %v1758_v2  ;;  %v1770_v60 = vrot.slane %v1769_v59, 4 }
 0x776   :  { %v1764_v0 = vrot.slane %v1763_v58, 2  ;;  %v1771_v12 = vadd.f32 %v1770_v60, %v1769_v59 }
 0x778   :  { %v1765_v15 = vadd.f32 %v1764_v0, %v1763_v58  ;;  %v1772_v29 = vrot.slane %v1771_v12, 2 }
 0x77a   :  { %v1766_v35 = vrot.slane %v1765_v15, 1  ;;  %v1773_v14 = vadd.f32 %v1772_v29, %v1771_v12 }
 0x77c   :  { %v1767_v49 = vadd.f32 %v1766_v35, %v1765_v15  ;;  %v1774_v38 = vrot.slane %v1773_v14, 1 }
 0x77e   :  { %v1768_v56 = vmul.f32 0.125, %v1767_v49  ;;  %v1775_v22 = vadd.f32 %v1774_v38, %v1773_v14 }
 0x780   :  { %v1776_v46 = vmul.f32 0.125, %v1775_v22  ;;  %v1777_v16 = vmul.f32 %v1768_v56, %v1768_v56  ;;  %v1779_v1 = vsub.f32 %v1758_v2, %v1768_v56 }
 0x782   :  { %v1778_v50 = vsub.f32 %v1776_v46, %v1777_v16  ;;  %v2082_v16 = vsel %vm1927_vm15, 1.0, %v3416_v23 }
 0x784   :  { %v1780_v52 = vadd.f32 1e-05, %v1778_v50 }
 0x786   :  { %3313 = vrsqrt.f32 %v1780_v52 }
 0x790   :  { %v3314_v4 = vpop.eup %3313 }
 0x791   :  { %v1782_v9 = vmul.f32 %v3314_v4, %v1779_v1 }
 0x793   :  { %v1783_v11 = vmax.f32 %v1782_v9, 0.0 }
 0x795   :  { %2830 = vmatmul.mubr.f32.vlgmr.msra.gmra.mrb[12].mxu1 %v1783_v11 }
 0x825   :  { %v1688_v3 = vpop.f32.mrb[10].mxu1 }
 0x826   :  { %v1689_v7 = vadd.f32 %v2081_v32, %v1688_v3  ;;  %v2761_v18 = vpop.f32.mrb[11].mxu1 }
 0x828   :  { %v1925_v19 = vsel %vm1924_vm10, %v1689_v7, -1e+30 }
 0x829   :  { %1934 = vmax.xlane.f32.xlu1 %v1925_v19 }
 0x868   :  { %v1850_v21 = vpop.f32.mrb[12].mxu1 }
 0x869   :  { %v2831_v24 = vpop.f32.mrb[13].mxu1  ;;  %2865 = vmatmul.mubr.f32.vlgmr.msra.gmra.mrb[28].mxu0 %v1850_v21 }
 0x8b6   :  { %v1935_v25 = vpop.xlane.xlu1 %1934 }
 0x8b7   :  { %v1936_v51 = vsub.f32 %v1925_v19, %v1935_v25 }
 0x8b9   :  { %v1937_v30 = vmul.f32 1.442695, %v1936_v51 }
 0x8bb   :  { %3315 = vpow2.f32 %v1937_v30 }
 0x8c5   :  { %v3316_v54 = vpop.eup %3315 }
 0x8c6   :  { %1939 = vadd.xlane.f32.xlu1 %v3316_v54 }
 0x93c   :  { %v1920_v5 = vpop.f32.mrb[28].mxu0 }
 0x93d   :  { %v1921_v17 = vadd.f32 %v2081_v32, %v1920_v5  ;;  %v2866_v41 = vpop.f32.mrb[29].mxu0  ;;  %v2083_v32 = vsel %vm1930_vm2, 1.0, %v3416_v23 }
 0x93f   :  { %v1926_v20 = vsel %vm1924_vm10, %v1921_v17, -1e+30 }
 0x940   :  { %1953 = vmax.xlane.f32.xlu1 %v1926_v20 }
 0x953   :  { %v1940_v44 = vpop.xlane.xlu1 %1939 }
 0x954   :  { %3317 = vrcp.f32 %v1940_v44 }
 0x95e   :  { %v3318_v62 = vpop.eup %3317 }
 0x95f   :  { %v1996_v63 = vmul.f32 %v3318_v62, %v3316_v54 }
 0x961   :  { %1997 = vmax.xlane.f32.xlu0 %v1996_v63 }
 0x9cd   :  { %v1954_v26 = vpop.xlane.xlu1 %1953 }
 0x9ce   :  { %v1955_v6 = vsub.f32 %v1926_v20, %v1954_v26 }
 0x9d0   :  { %v1956_v10 = vmul.f32 1.442695, %v1955_v6 }
 0x9d2   :  { %3319 = vpow2.f32 %v1956_v10 }
 0x9d3   :  { %3321 = vlog2.f32 %v1940_v44 }
 0x9dc   :  { %v3320_v36 = vpop.eup %3319 }
 0x9dd   :  { %v3322_v55 = vpop.eup %3321 }
 0x9de   :  { %v1942_v2 = vmul.f32 0.6931472, %v3322_v55 }
 0x9e0   :  { %v1943_v58 = vadd.f32 %v1942_v2, %v1935_v25 }
 0x9e2   :  { %v1944_v15 = vsub.f32 %v1925_v19, %v1943_v58 }
 0x9ee   :  { %v4172_v31 = vpop.xlane.xlu0 %1997 }
 0x9ef   :  { %vm1999_vm11 = vcmp.eq.f32.partialorder %v1996_v63, %v4172_v31  ;;  %vm2015_vm1 = vcmp.ge.f32.partialorder %v4172_v31, 0.95 }
 0x9f0   :  { %v2000_v33 = vsel %vm1999_vm11, %v4094_v8, 128  ;;  %v2084_v11 = vsel %vm2015_vm1, 1.0, %v3416_v23 }
 0x9f1   :  { %v2002_v27 = vshra.s32 %v2000_v33, 16  ;;  %v2001_v39 = vand.u32 65535, %v2000_v33 }
 0x9f3   :  { %v2004_v34 = vcvt.s32.f32 %v2002_v27  ;;  %v2003_v42 = vcvt.s32.f32 %v2001_v39 }
 0x9f5   :  { %2005 = vmin.xlane.f32.xlu1 %v2004_v34 }
 0x9f9   :  { %1958 = vadd.xlane.f32.xlu1 %v3320_v36 }
 0xa82   :  { %v2006_v40 = vpop.xlane.xlu1 %2005 }
 0xa83   :  { %vm2007_vm12 = vcmp.eq.f32.partialorder %v2004_v34, %v2006_v40  ;;  %v2012_v60 = vcvt.f32.s32 %v2006_v40 }
 0xa84   :  { %v2008_v43 = vsel %vm2007_vm12, %v2003_v42, inf }
 0xa85   :  { %2009 = vmin.xlane.f32.xlu1 %v2008_v43  ;;  %v2013_v35 = vshll.u32 %v2012_v60, 16 }
 0xa86   :  { %v1959_v48 = vpop.xlane.xlu1 %1958 }
 0xa87   :  { %3323 = vlog2.f32 %v1959_v48 }
 0xa91   :  { %v3324_v45 = vpop.eup %3323 }
 0xa92   :  { %v1961_v59 = vmul.f32 0.6931472, %v3324_v45 }
 0xa94   :  { %v1962_v29 = vadd.f32 %v1961_v59, %v1954_v26 }
 0xa96   :  { %1946 = vperm.xlu1 %3293, %v1933_v47   ;;  %v1963_v38 = vsub.f32 %v1926_v20, %v1962_v29 }
 0xb12   :  { %v2010_v53 = vpop.xlane.xlu1 %2009 }
 0xb13   :  { %v2011_v0 = vcvt.f32.s32 %v2010_v53 }
 0xb15   :  { %v2014_v49 = vadd.s32 %v2013_v35, %v2011_v0 }
 0xb16   :  { %v1947_v12 = vpop.permute.xlu1 %1946 }
 0xb17   :  { %vm1948_vm13 = vcmp.eq.s32.totalorder %v4094_v8, %v1947_v12  ;;  %vm2018_vm14 = vcmp.eq.s32.totalorder %v4094_v8, %v2014_v49 }
 0xb18   :  { %v1949_v14 = vsel %vm1948_vm13, %v1944_v15, 0.0  ;;  %v1964_v56 = vsel %vm1948_vm13, %v1963_v38, 0.0  ;;  %v2019_v22 = vsel %vm2018_vm14, %v1963_v38, 0.0 }
 0xb19   :  { %1950 = vadd.xlane.f32.xlu1 %v1949_v14 }
 0xb1d   :  { %1965 = vadd.xlane.f32.xlu1 %v1964_v56 }
 0xb21   :  { %2020 = vadd.xlane.f32.xlu1 %v2019_v22 }
 0xb25   :  { %1358 = vadd.xlane.f32.xlu1 %v4149_v57 }
 0xb29   :  { %1398 = vadd.xlane.f32.xlu1 %v4143_v28 }
 0xb2d   :  { %1438 = vadd.xlane.f32.xlu1 %v4139_v13 }
 0xba6   :  { %v1951_v46 = vpop.xlane.xlu1 %1950 }
 0xba7   :  { %v1952_v50 = vsub.f32 0.0, %v1951_v46 }
 0xba9   :  { %v1968_v52 = vmul.f32 %v2082_v16, %v1952_v50 }
 0xbaa   :  { %v1966_v1 = vpop.xlane.xlu1 %1965 }
 0xbab   :  { %v1967_v4 = vsub.f32 0.0, %v1966_v1  ;;  %v1970_v8 = vsel %vm1969_vm0, %v1968_v52, 0.0 }
 0xbac   :  { %1971 = vadd.xlane.f32.xlu1 %v1970_v8 }
 0xbad   :  { %v1980_v57 = vmul.f32 %v2082_v16, %v1967_v4 }
 0xbae   :  { %v2021_v28 = vpop.xlane.xlu1 %2020 }
 0xbaf   :  { %v2022_v13 = vsub.f32 0.0, %v2021_v28  ;;  %v1981_v9 = vsel %vm1969_vm0, %v1980_v57, 0.0 }
 0xbb0   :  { %1982 = vadd.xlane.f32.xlu1 %v1981_v9 }
 0xbb1   :  { %v2023_v3 = vmul.f32 %v2084_v11, %v2022_v13 }
 0xbb2   :  { %v1359_v7 = vpop.xlane.xlu1 %1358 }
 0xbb3   :  { %v1360_v18 = vrot.slane %v1359_v7, 4  ;;  %v2024_v19 = vmul.f32 %v2083_v32, %v2023_v3 }
 0xbb5   :  { %v1361_v21 = vadd.f32 %v1360_v18, %v1359_v7  ;;  %v2025_v24 = vsel %vm1969_vm0, %v2024_v19, 0.0 }
 0xbb6   :  { %2026 = vadd.xlane.f32.xlu1 %v2025_v24  ;;  %v1399_v25 = vpop.xlane.xlu1 %1398 }
 0xbb7   :  { %v1362_v51 = vrot.slane %v1361_v21, 2  ;;  %v1400_v61 = vrot.slane %v1399_v25, 4 }
 0xbb9   :  { %v1401_v30 = vadd.f32 %v1400_v61, %v1399_v25  ;;  %v1363_v54 = vadd.f32 %v1362_v51, %v1361_v21 }
 0xbba   :  { %v1439_v5 = vpop.xlane.xlu1 %1438 }
 0xbbb   :  { %v1402_v17 = vrot.slane %v1401_v30, 2  ;;  %v1440_v41 = vrot.slane %v1439_v5, 4  ;;  %v1364_v20 = vrot.slane %v1363_v54, 1 }
 0xbbd   :  { %v1441_v44 = vadd.f32 %v1440_v41, %v1439_v5  ;;  %v1365_v62 = vadd.f32 %v1364_v20, %v1363_v54  ;;  %v1403_v23 = vadd.f32 %v1402_v17, %v1401_v30 }
 0xbbf   :  { %v1442_v63 = vrot.slane %v1441_v44, 2  ;;  %3271 = vpush %v1365_v62  ;;  %v1404_v26 = vrot.slane %v1403_v23, 1 }
 0xbc1   :  { %v1405_v6 = vadd.f32 %v1404_v26, %v1403_v23  ;;  %v1443_v10 = vadd.f32 %v1442_v63, %v1441_v44 }
 0xbc3   :  { %3273 = vpush %v1405_v6  ;;  %v1444_v31 = vrot.slane %v1443_v10, 1 }
 0xbc5   :  { %v1445_v33 = vadd.f32 %v1444_v31, %v1443_v10 }
 0xbc7   :  { %3275 = vpush %v1445_v33 }
 0xbf0   :  { %s3272_s0 = spop %3271 }
 0xbf4   :  { %s3274_s12 = spop %3273 }
 0xbf5   :  { %s1450_s14 = ssub.f32 %s3272_s0, %s3274_s12 }
 0xbf7   :  { %s1451_s16 = smul.f32 0.005, %s1450_s14 }
 0xbf8   :  { %s3276_s13 = spop %3275 }
 0xbf9   :  { %s1447_s3 = smul.f32 2.0, %s3276_s13 }
 0xbfb   :  { %s1448_s15 = ssub.f32 %s3274_s12, %s1447_s3 }
 0xbfd   :  { %s1449_s7 = sadd.f32 64.0, %s1448_s15 }
 0xbff   :  { %s4193_s20 = sadd.f32 %s1451_s16, %s1449_s7 }
 0xc01   :  { %2047 = sst [smem:[#allocation8 + $0x3]] %s4193_s20 }
 0xc39   :  { %v1972_v27 = vpop.xlane.xlu1 %1971 }
 0xc3a   :  { %v1973_v34 = vrot.slane %v1972_v27, 4 }
 0xc3c   :  { %v1974_v36 = vadd.f32 %v1973_v34, %v1972_v27 }
 0xc3d   :  { %v1983_v37 = vpop.xlane.xlu1 %1982 }
 0xc3e   :  { %v1975_v39 = vrot.slane %v1974_v36, 2  ;;  %v1984_v40 = vrot.slane %v1983_v37, 4 }
 0xc40   :  { %v1985_v42 = vadd.f32 %v1984_v40, %v1983_v37  ;;  %v1976_v43 = vadd.f32 %v1975_v39, %v1974_v36 }
 0xc42   :  { %v1986_v47 = vrot.slane %v1985_v42, 2  ;;  %v1977_v48 = vrot.slane %v1976_v43, 1 }
 0xc43   :  { %v2027_v55 = vpop.xlane.xlu1 %2026 }
 0xc44   :  { %v2028_v2 = vrot.slane %v2027_v55, 4  ;;  %v1978_v45 = vadd.f32 %v1977_v48, %v1976_v43  ;;  %v1987_v59 = vadd.f32 %v1986_v47, %v1985_v42 }
 0xc46   :  { %v2029_v53 = vadd.f32 %v2028_v2, %v2027_v55  ;;  %3277 = vpush %v1978_v45  ;;  %v1988_v58 = vrot.slane %v1987_v59, 1 }
 0xc48   :  { %v2030_v60 = vrot.slane %v2029_v53, 2  ;;  %v1989_v0 = vadd.f32 %v1988_v58, %v1987_v59 }
 0xc4a   :  { %v2031_v12 = vadd.f32 %v2030_v60, %v2029_v53  ;;  %3279 = vpush %v1989_v0 }
 0xc4c   :  { %v2032_v15 = vrot.slane %v2031_v12, 1 }
 0xc4e   :  { %v2033_v29 = vadd.f32 %v2032_v15, %v2031_v12 }
 0xc50   :  { %3281 = vpush %v2033_v29 }
 0xc77   :  { %s3278_s17 = spop %3277 }
 0xc7b   :  { %s3280_s1 = spop %3279 }
 0xc7c   :  { %s1991_s19 = sadd.f32 %s3280_s1, %s3278_s17 }
 0xc7e   :  { %s1994_s4 = smul.f32 0.25, %s1991_s19 }
 0xc80   :  { %2043 = sst [smem:[#allocation8 + $0x1]] %s1994_s4 }
 0xc81   :  { %s3282_s21 = spop %3281 }
 0xc82   :  { %s2037_s22 = smul.f32 0.25, %s3282_s21 }
 0xc84   :  { %s2038_s18 = sadd.f32 %s2037_s22, %s1994_s4 }
 0xc85   :  { %2045 = sst [smem:[#allocation8 + $0x2]] %s2037_s22 }
 0xc86   :  { %s2039_s9 = sadd.f32 %s2038_s18, %s4193_s20 }
 0xc88   :  { %2041 = sst [smem:[#allocation8]] %s2039_s9 }
 0xc89   :  { %3402 = shalt.err (!%p3399_p0)
}
 0xc8a   :  { %s3418_s2 = smov [#allocation8]  }
 0xc8b   :  { %2057 = dma.smem_to_vmem %s3418_s2, 16, %s2055_s5, [#allocation4]  }
 0xc8c   :  { %3407 = dma.done.wait [#allocation4], 16  }
 0xc8d   :  { %3408 = vsyncadd [#allocation4], 4294967280 }
 0xc8e   :  { %2061 = sfence }
 0xc8f   :  { %2062 = vsyncpa [#allocation3], 1 }
 0xc90   :  { %2063 = vsyncpa [#allocation6], 1 }
 0xc91   :  { %2064 = vsyncpa [#allocation4], 1 }

</bundles_post_ra>
